<compile_context>
chip_gen: v6e
topology: v6e:2x2x1
jax: 0.10.0
libtpu: 0.0.40
codegen_flags: <defaults>
</compile_context>

<pallas_src>
import functools

import jax
import jax.numpy as jnp
from jax.experimental import pallas as pl
from jax.experimental.pallas import tpu as pltpu


def _silu(x):
    return x * jax.nn.sigmoid(x)


def _round_up(x, m):
    return ((x + m - 1) // m) * m


def _pick_tile(dim, cap, quantum=128):
    """Largest block <= cap that divides dim and is a multiple of quantum
    (full dim if it already fits; full-dim fallback for awkward sizes)."""
    if dim <= cap:
        return dim
    t = (min(cap, dim) // quantum) * quantum
    while t >= quantum:
        if dim % t == 0:
            return t
        t -= quantum
    # TODO(synk): pad awkward intermediate dims instead of taking the full slab.
    return dim


def _choose_token_tile(T, target, quantum=128):
    """Token tile: multiple of `quantum`, <= target, and (when enough work)
    giving >= 2 token tiles so the parallel axis covers both v7x TensorCores."""
    tm = max(quantum, (min(target, _round_up(T, quantum)) // quantum) * quantum)
    while tm > quantum and _round_up(T, tm) // tm < 2:
        tm -= quantum
    return tm


def _tpu_defaults():
    """(vmem_capacity, vmem_limit_bytes, token_tile_target) for this generation."""
    vmem = 64 * 2**20          # conservative default (v7x-sized) if query fails
    kind = ""
    try:
        info = pltpu.get_tpu_info()
        vmem = int(getattr(info, "vmem_capacity_bytes", vmem))
    except Exception:
        pass
    try:
        kind = jax.devices()[0].device_kind.lower()
    except Exception:
        pass
    if vmem <= 80 * 2**20:     # v7x-class (64 MiB VMEM, HBM ridge ~310 FLOP/B)
        token_target = 384
    elif "v5" in kind:         # v5e (ridge ~240 FLOP/B, 4x128^2 MXU)
        token_target = 256
    else:                      # v6e-class (ridge ~650 FLOP/B)
        token_target = 512
    vmem_limit = int(vmem * 0.82)   # ~52 MiB on v7x, ~105 MiB on v5e/v6e
    return vmem, vmem_limit, token_target


# -----------------------------------------------------------------------------
# Kernel 1: fused router + shared-expert MLP.   grid = (token_tiles, inter_tiles)
#   j == 0    : zero the f32 accumulator; router logits in f32 (upcast of the
#               native-dtype x tile), unrolled top-k (ties -> lowest index like
#               torch.topk), scatter(-inf)+sigmoid => scores.
#   every j   : bf16 fused gate|up matmul, silu*up in f32, bf16 down matmul,
#               accumulate into f32 VMEM scratch.
#   j == last : write the shared-expert output once, in the model dtype.
# -----------------------------------------------------------------------------
def router_shared_kernel(x_ref, wr_ref, gu_ref, wd_ref, scores_ref, out_ref,
                         acc_ref, *, top_k, inter_tile):
    j = pl.program_id(1)
    x_raw = x_ref[...]                       # native dtype (bf16 in production)

    @pl.when(j == 0)
    def _():
        acc_ref[...] = jnp.zeros_like(acc_ref)
        # Router stays in f32 for top-k tie stability (free when x is f32; a
        # single (tm, H) upcast per token tile when x is bf16).
        logits = jnp.dot(x_raw.astype(jnp.float32), wr_ref[...],
                         preferred_element_type=jnp.float32)      # (tm, E)
        tm, E = logits.shape
        lane = jax.lax.broadcasted_iota(jnp.int32, (tm, E), 1)
        cur = logits
        mask = jnp.zeros((tm, E), dtype=jnp.bool_)
        for _ in range(top_k):                                    # static unroll
            row_max = jnp.max(cur, axis=1, keepdims=True)
            is_max = cur == row_max
            first_idx = jnp.min(jnp.where(is_max, lane, E), axis=1, keepdims=True)
            first = lane == first_idx
            mask = jnp.logical_or(mask, first)
            cur = jnp.where(first, -jnp.inf, cur)
        # scatter_(-inf) then sigmoid: unselected entries -> sigmoid(-inf) == 0
        scores_ref[...] = jnp.where(mask, jax.nn.sigmoid(logits), 0.0)

    # Heavy path: no-op cast when the model dtype is already bf16.
    x_bf16 = x_raw.astype(jnp.bfloat16)
    gu = jnp.dot(x_bf16, gu_ref[...], preferred_element_type=jnp.float32)  # (tm, 2*ti)
    gate = gu[:, :inter_tile]
    up = gu[:, inter_tile:]
    h = (_silu(gate) * up).astype(jnp.bfloat16)                   # f32 VPU math
    acc_ref[...] += jnp.dot(h, wd_ref[...], preferred_element_type=jnp.float32)

    @pl.when(j == pl.num_programs(1) - 1)
    def _():
        out_ref[...] = acc_ref[...].astype(out_ref.dtype)


# -----------------------------------------------------------------------------
# Kernel 2 (optional): routed experts, accumulated on top of the shared output.
# grid = (token_tiles, num_experts, expert_dim_tiles).  Dense over experts
# (unselected tokens carry score 0 -> contribute exactly 0; no biases).
# The shared-expert output is aliased into out_ref and seeds the accumulator, so
# no separate `out = shared + routed` pass is needed.
# TODO(synk): for real Llama4 (E=16, top_k=1) switch to megablocks-style token
# gathering with PrefetchScalarGridSpec group offsets.
# -----------------------------------------------------------------------------
def routed_experts_kernel(x_ref, s_ref, shared_ref, gu_ref, dn_ref, out_ref,
                          acc_ref, xs_ref, *, contract_tile):
    e = pl.program_id(1)
    k = pl.program_id(2)

    @pl.when((e == 0) & (k == 0))
    def _():
        acc_ref[...] = shared_ref[...].astype(jnp.float32)

    @pl.when(k == 0)
    def _():
        # Per-expert score column from the resident (tm, E) block, then the
        # score-scaled bf16 activation -- hoisted out of the k loop.
        tm, E = s_ref.shape
        lane = jax.lax.broadcasted_iota(jnp.int32, (tm, E), 1)
        score = jnp.sum(jnp.where(lane == e, s_ref[...], 0.0),
                        axis=1, keepdims=True)                    # (tm, 1) f32
        xs_ref[...] = (x_ref[...].astype(jnp.float32) * score).astype(jnp.bfloat16)

    gu = jnp.dot(xs_ref[...], gu_ref[...], preferred_element_type=jnp.float32)
    h = (_silu(gu[:, :contract_tile]) * gu[:, contract_tile:]).astype(jnp.bfloat16)
    acc_ref[...] += jnp.dot(h, dn_ref[...], preferred_element_type=jnp.float32)

    @pl.when((e == pl.num_programs(1) - 1) & (k == pl.num_programs(2) - 1))
    def _():
        out_ref[...] = acc_ref[...].astype(out_ref.dtype)


# -----------------------------------------------------------------------------
# One-time weight preparation (load time, NOT per forward call).
# -----------------------------------------------------------------------------
def prepare_params(params, *, compute_dtype=jnp.bfloat16,
                   token_tile_target=None, inter_tile_target=None):
    E, H, twoD = params["gate_up_proj"].shape
    D = twoD // 2
    I = params["gate_w"].shape[0]

    vmem_cap, vmem_limit, tok_target = _tpu_defaults()
    if token_tile_target is None:
        token_tile_target = tok_target

    tm = token_tile_target                      # worst-case tile for budgeting
    e_lanes = max(128, _round_up(E, 128))       # lane-padded expert count
    wbytes = jnp.dtype(compute_dtype).itemsize  # 2 for bf16
    slack = 4 * 2**20                           # compiler-internal scratch headroom

    # Kernel-1 fixed VMEM (double-buffered pipeline buffers; x/out counted at
    # 4 B worst case so an f32-input model still fits).
    fixed1 = (2 * tm * H * 4            # x tile
              + 2 * H * e_lanes * 4     # router W^T (f32, lane-padded)
              + 2 * tm * e_lanes * 4    # scores out tile
              + 2 * tm * H * 4          # shared-out tile
              + tm * H * 4              # f32 accumulator scratch
              + slack)
    # Per unit of ti: gate|up slab (H x 2ti) + down slab (ti x H), bf16, x2 bufs.
    per_ti = 2 * (H * 2 * wbytes) + 2 * (H * wbytes)
    budget1 = vmem_limit - fixed1
    ti_cap = max(128, (budget1 // per_ti) // 128 * 128) if budget1 > per_ti * 128 else 128
    if inter_tile_target is not None:
        ti_cap = min(ti_cap, inter_tile_target)
    ti = _pick_tile(I, ti_cap, 128)

    # Kernel-2 fixed VMEM adds scores block, aliased shared block, xs scratch.
    fixed2 = fixed1 + 2 * tm * e_lanes * 4 + 2 * tm * H * 4 + tm * H * 2
    budget2 = vmem_limit - fixed2
    tk_cap = max(128, (budget2 // per_ti) // 128 * 128) if budget2 > per_ti * 128 else 128
    if inter_tile_target is not None:
        tk_cap = min(tk_cap, inter_tile_target)
    tk = _pick_tile(D, tk_cap, 128)
    nK = D // tk

    # Shared expert: gate/up fused & packed per intermediate tile -> (nJ, H, 2*ti)
    g_t = params["gate_w"].T.reshape(H, I // ti, ti)
    u_t = params["up_w"].T.reshape(H, I // ti, ti)
    shared_gu = jnp.transpose(jnp.concatenate([g_t, u_t], axis=-1),
                              (1, 0, 2)).astype(compute_dtype)
    shared_down = params["down_w"].T.astype(compute_dtype)             # (I, H)

    # Routed experts: gate/up packed per expert-dim tile -> (E*nK, H, 2*tk)
    ge = params["gate_up_proj"][:, :, :D].reshape(E, H, nK, tk)
    ue = params["gate_up_proj"][:, :, D:].reshape(E, H, nK, tk)
    experts_gu = jnp.transpose(jnp.concatenate([ge, ue], axis=-1),
                               (0, 2, 1, 3)).reshape(E * nK, H, 2 * tk)
    experts_gu = experts_gu.astype(compute_dtype)
    experts_down = params["down_proj"].astype(compute_dtype)           # (E, D, H)

    router_w_t = params["router_w"].T.astype(jnp.float32)              # (H, E), f32

    meta = dict(hidden=H, num_experts=E, expert_dim=D, inter_shared=I,
                ti=ti, tk=tk, token_tile_target=token_tile_target,
                vmem_limit_bytes=int(vmem_limit))
    return dict(router_w_t=router_w_t, shared_gu=shared_gu, shared_down=shared_down,
                experts_gu=experts_gu, experts_down=experts_down, meta=meta)


# -----------------------------------------------------------------------------
# Forward wrapper.
# -----------------------------------------------------------------------------
def llama4_text_moe(hidden_states, prepared, top_k, *, add_routed=False):
    meta = prepared["meta"]
    H, E = meta["hidden"], meta["num_experts"]
    I, D = meta["inter_shared"], meta["expert_dim"]
    ti, tk = meta["ti"], meta["tk"]

    orig_dtype = hidden_states.dtype
    x = hidden_states.reshape(-1, H)            # native dtype; NO f32 promotion
    T = x.shape[0]

    tm = _choose_token_tile(T, meta["token_tile_target"], quantum=128)
    T_pad = _round_up(T, tm)
    if T_pad != T:
        x = jnp.pad(x, ((0, T_pad - T), (0, 0)))
    nT, nJ = T_pad // tm, I // ti

    scores_te, shared_out = pl.pallas_call(
        functools.partial(router_shared_kernel, top_k=top_k, inter_tile=ti),
        grid=(nT, nJ),
        out_shape=(jax.ShapeDtypeStruct((T_pad, E), jnp.float32),
                   jax.ShapeDtypeStruct((T_pad, H), orig_dtype)),
        in_specs=[
            pl.BlockSpec((tm, H), lambda i, j: (i, 0)),               # x (native dtype)
            pl.BlockSpec((H, E), lambda i, j: (0, 0)),                # router W^T (f32)
            pl.BlockSpec((None, H, 2 * ti), lambda i, j: (j, 0, 0)),  # packed gate|up (bf16)
            pl.BlockSpec((ti, H), lambda i, j: (j, 0)),               # down^T (bf16)
        ],
        out_specs=(
            pl.BlockSpec((tm, E), lambda i, j: (i, 0)),
            pl.BlockSpec((tm, H), lambda i, j: (i, 0)),
        ),
        scratch_shapes=[pltpu.VMEM((tm, H), jnp.float32)],
        compiler_params=pltpu.CompilerParams(
            dimension_semantics=("parallel", "arbitrary"),
            vmem_limit_bytes=meta["vmem_limit_bytes"]),
    )(x, prepared["router_w_t"], prepared["shared_gu"], prepared["shared_down"])

    # NOTE: the reference's `out.add(routed_sum)` is out-of-place and discarded,
    # so the routed experts do not contribute to `out`.  We SKIP that dead
    # compute by default.  `add_routed=True` gives the `out = shared + routed`
    # variant (the presumably-intended `add_` semantics).
    out = shared_out
    if add_routed:
        nK = D // tk
        out = pl.pallas_call(
            functools.partial(routed_experts_kernel, contract_tile=tk),
            grid=(nT, E, nK),
            out_shape=jax.ShapeDtypeStruct((T_pad, H), orig_dtype),
            in_specs=[
                pl.BlockSpec((tm, H), lambda i, e, k: (i, 0)),         # x
                pl.BlockSpec((tm, E), lambda i, e, k: (i, 0)),         # scores (resident)
                pl.BlockSpec((tm, H), lambda i, e, k: (i, 0)),         # shared out (aliased)
                pl.BlockSpec((None, H, 2 * tk),
                             lambda i, e, k: (e * nK + k, 0, 0)),      # packed gate|up
                pl.BlockSpec((None, tk, H), lambda i, e, k: (e, k, 0)),  # down
            ],
            out_specs=pl.BlockSpec((tm, H), lambda i, e, k: (i, 0)),
            scratch_shapes=[pltpu.VMEM((tm, H), jnp.float32),          # f32 accumulator
                            pltpu.VMEM((tm, H), jnp.bfloat16)],        # score-scaled x
            input_output_aliases={2: 0},   # accumulate on top of shared_out
            compiler_params=pltpu.CompilerParams(
                dimension_semantics=("parallel", "arbitrary", "arbitrary"),
                vmem_limit_bytes=meta["vmem_limit_bytes"]),
        )(x, scores_te, shared_out, prepared["experts_gu"], prepared["experts_down"])

    if T_pad != T:
        out = out[:T]
        scores_te = scores_te[:T]

    router_scores = scores_te.T.astype(orig_dtype)                    # (E, T)
    return out, router_scores


# -----------------------------------------------------------------------------
# Pure-JAX reference (correctness check).
# -----------------------------------------------------------------------------
def llama4_text_moe_ref(hidden_states, params, top_k):
    E, H, twoD = params["gate_up_proj"].shape
    D = twoD // 2
    x = hidden_states.reshape(-1, H).astype(jnp.float32)
    T = x.shape[0]
    logits = x @ params["router_w"].T                                 # (T, E)
    top_val, top_idx = jax.lax.top_k(logits, top_k)
    scattered = jnp.full_like(logits, -jnp.inf)
    scattered = scattered.at[jnp.arange(T)[:, None], top_idx].set(top_val)
    scores_te = jax.nn.sigmoid(scattered)                             # (T, E)
    shared = (_silu(x @ params["gate_w"].T) * (x @ params["up_w"].T)) @ params["down_w"].T
    routed = jnp.zeros((T, H), jnp.float32)
    for e in range(E):
        xs = x * scores_te[:, e][:, None]
        gu = xs @ params["gate_up_proj"][e]
        routed = routed + (_silu(gu[:, :D]) * gu[:, D:]) @ params["down_proj"][e]
    return shared, scores_te.T, routed


if __name__ == "__main__":
    # Small self-consistent config: hidden_size=128, intermediate_size=64,
    # num_local_experts=4, num_experts_per_tok=2, hidden_act="silu".
    B, S, H = 2, 8, 128
    E, D, TOP_K = 4, 64, 2
    I = D

    key = jax.random.PRNGKey(0)
    keys = jax.random.split(key, 7)
    params = {
        "router_w":     0.02 * jax.random.normal(keys[0], (E, H), jnp.float32),
        "gate_up_proj": 0.02 * jax.random.normal(keys[1], (E, H, 2 * D), jnp.float32),
        "down_proj":    0.02 * jax.random.normal(keys[2], (E, D, H), jnp.float32),
        "gate_w":       0.02 * jax.random.normal(keys[3], (I, H), jnp.float32),
        "up_w":         0.02 * jax.random.normal(keys[4], (I, H), jnp.float32),
        "down_w":       0.02 * jax.random.normal(keys[5], (H, I), jnp.float32),
    }
    hidden_states = jax.random.normal(keys[6], (B, S, H), jnp.float32)

    prepared = prepare_params(params)   # one-time weight prep (load time)

    # Literal reference semantics (routed contribution discarded by `out.add(...)`).
    out, router_scores = llama4_text_moe(hidden_states, prepared, TOP_K)
    jax.block_until_ready((out, router_scores))

    shared_ref, scores_ref, routed_ref = llama4_text_moe_ref(hidden_states, params, TOP_K)
    assert out.shape == (B * S, H) and router_scores.shape == (E, B * S)
    assert jnp.allclose(router_scores, scores_ref, rtol=1e-2, atol=1e-3), "router score mismatch"
    assert jnp.allclose(out, shared_ref, rtol=2e-2, atol=2e-3), "shared/output mismatch"

    # `out = shared + routed` variant (the presumably-intended add_ semantics).
    out_full, scores2 = llama4_text_moe(hidden_states, prepared, TOP_K, add_routed=True)
    jax.block_until_ready((out_full, scores2))
    assert jnp.allclose(out_full, shared_ref + routed_ref, rtol=2e-2, atol=2e-3), "routed mismatch"

    print("KERNEL_OK")
</pallas_src>

<mosaic_0001>
module attributes {stable_mosaic.version = 11 : i64} {
  func.func @router_shared_kernel(%arg0: i32, %arg1: i32, %arg2: memref<128x128xf32, #tpu.memory_space<vmem>>, %arg3: memref<128x4xf32, #tpu.memory_space<vmem>>, %arg4: memref<1x128x128xbf16, #tpu.memory_space<vmem>>, %arg5: memref<64x128xbf16, #tpu.memory_space<vmem>>, %arg6: memref<128x4xf32, #tpu.memory_space<vmem>>, %arg7: memref<128x128xf32, #tpu.memory_space<vmem>>, %arg8: memref<128x128xf32, #tpu.memory_space<vmem>>) attributes {dimension_semantics = [#tpu.dimension_semantics<parallel>, #tpu.dimension_semantics<arbitrary>], iteration_bounds = array<i64: 1, 1>, scalar_prefetch = 0 : i64, scratch_operands = 1 : i64, tpu.core_type = #tpu.core_type<tc>, window_params = [{transform_indices = @transform_0, window_bounds = array<i64: 128, 128>}, {pipeline_mode = #tpu.pipeline_mode<synchronous>, transform_indices = @transform_1, window_bounds = array<i64: 128, 4>}, {transform_indices = @transform_2, window_bounds = array<i64: 1, 128, 128>}, {transform_indices = @transform_3, window_bounds = array<i64: 64, 128>}, {transform_indices = @transform_4, window_bounds = array<i64: 128, 4>}, {transform_indices = @transform_5, window_bounds = array<i64: 128, 128>}]} {
    %c0 = arith.constant 0 : index
    %c0_0 = arith.constant 0 : index
    %0 = vector.load %arg2[%c0, %c0_0] : memref<128x128xf32, #tpu.memory_space<vmem>>, vector<128x128xf32>
    %c0_i32 = arith.constant 0 : i32
    %1 = arith.cmpi eq, %arg1, %c0_i32 : i32
    %2 = arith.extui %1 : i1 to i32
    %c0_i32_1 = arith.constant 0 : i32
    %3 = arith.cmpi ne, %2, %c0_i32_1 : i32
    scf.if %3 {
      %cst_15 = arith.constant 0.000000e+00 : f32
      %26 = vector.broadcast %cst_15 : f32 to vector<128x128xf32>
      %c0_16 = arith.constant 0 : index
      %c0_17 = arith.constant 0 : index
      %27 = vector.load %arg8[%c0_16, %c0_17] : memref<128x128xf32, #tpu.memory_space<vmem>>, vector<128x128xf32>
      tpu.vector_store %arg8[%c0_16, %c0_17], %26 {strides = array<i32>} : memref<128x128xf32, #tpu.memory_space<vmem>>, vector<128x128xf32>,
      %c0_18 = arith.constant 0 : index
      %c0_19 = arith.constant 0 : index
      %28 = vector.load %arg3[%c0_18, %c0_19] : memref<128x4xf32, #tpu.memory_space<vmem>>, vector<128x4xf32>
      %cst_20 = arith.constant dense<0.000000e+00> : vector<128x4xf32>
      %29 = tpu.matmul %0, %28, %cst_20 {dimension_numbers = #tpu.dot_dimension_numbers<[1], [0], [0], [1], [0, 0, 1, 1], [], []>} : vector<128x128xf32>, vector<128x4xf32>, vector<128x4xf32> -> vector<128x4xf32>
      %30 = tpu.iota {dimensions = array<i32: 1>} : vector<128x4xi32>
      %false = arith.constant false
      %31 = vector.broadcast %false : i1 to vector<128x4xi1>
      %cst_21 = arith.constant dense<0xFF800000> : vector<128xf32>
      %32 = vector.multi_reduction <maximumf>, %29, %cst_21 [1] : vector<128x4xf32> to vector<128xf32>
      %33 = vector.shape_cast %32 : vector<128xf32> to vector<128x1xf32>
      %34 = vector.broadcast %33 : vector<128x1xf32> to vector<128x4xf32>
      %35 = arith.cmpf oeq, %29, %34 : vector<128x4xf32>
      %c4_i32 = arith.constant 4 : i32
      %36 = vector.broadcast %c4_i32 : i32 to vector<128x4xi32>
      %37 = arith.select %35, %30, %36 : vector<128x4xi1>, vector<128x4xi32>
      %cst_22 = arith.constant dense<2147483647> : vector<128xi32>
      %38 = vector.multi_reduction <minsi>, %37, %cst_22 [1] : vector<128x4xi32> to vector<128xi32>
      %39 = vector.shape_cast %38 : vector<128xi32> to vector<128x1xi32>
      %40 = vector.broadcast %39 : vector<128x1xi32> to vector<128x4xi32>
      %41 = arith.cmpi eq, %30, %40 : vector<128x4xi32>
      %42 = arith.ori %31, %41 : vector<128x4xi1>
      %cst_23 = arith.constant 0xFF800000 : f32
      %43 = vector.broadcast %cst_23 : f32 to vector<128x4xf32>
      %44 = arith.select %41, %43, %29 : vector<128x4xi1>, vector<128x4xf32>
      %cst_24 = arith.constant dense<0xFF800000> : vector<128xf32>
      %45 = vector.multi_reduction <maximumf>, %44, %cst_24 [1] : vector<128x4xf32> to vector<128xf32>
      %46 = vector.shape_cast %45 : vector<128xf32> to vector<128x1xf32>
      %47 = vector.broadcast %46 : vector<128x1xf32> to vector<128x4xf32>
      %48 = arith.cmpf oeq, %44, %47 : vector<128x4xf32>
      %c4_i32_25 = arith.constant 4 : i32
      %49 = vector.broadcast %c4_i32_25 : i32 to vector<128x4xi32>
      %50 = arith.select %48, %30, %49 : vector<128x4xi1>, vector<128x4xi32>
      %cst_26 = arith.constant dense<2147483647> : vector<128xi32>
      %51 = vector.multi_reduction <minsi>, %50, %cst_26 [1] : vector<128x4xi32> to vector<128xi32>
      %52 = vector.shape_cast %51 : vector<128xi32> to vector<128x1xi32>
      %53 = vector.broadcast %52 : vector<128x1xi32> to vector<128x4xi32>
      %54 = arith.cmpi eq, %30, %53 : vector<128x4xi32>
      %55 = arith.ori %42, %54 : vector<128x4xi1>
      %56 = arith.negf %29 : vector<128x4xf32>
      %57 = math.exp %56 : vector<128x4xf32>
      %cst_27 = arith.constant 1.000000e+00 : f32
      %58 = vector.broadcast %cst_27 : f32 to vector<128x4xf32>
      %59 = arith.addf %58, %57 : vector<128x4xf32>
      %60 = arith.divf %58, %59 : vector<128x4xf32>
      %cst_28 = arith.constant 0.000000e+00 : f32
      %61 = vector.broadcast %cst_28 : f32 to vector<128x4xf32>
      %62 = arith.select %55, %60, %61 : vector<128x4xi1>, vector<128x4xf32>
      %c0_29 = arith.constant 0 : index
      %c0_30 = arith.constant 0 : index
      %63 = vector.load %arg6[%c0_29, %c0_30] : memref<128x4xf32, #tpu.memory_space<vmem>>, vector<128x4xf32>
      tpu.vector_store %arg6[%c0_29, %c0_30], %62 {strides = array<i32>} : memref<128x4xf32, #tpu.memory_space<vmem>>, vector<128x4xf32>,
    } else {
    }
    %4 = arith.truncf %0 : vector<128x128xf32> to vector<128x128xbf16>
    %c0_2 = arith.constant 0 : index
    %c0_3 = arith.constant 0 : index
    %c0_4 = arith.constant 0 : index
    %5 = vector.load %arg4[%c0_2, %c0_3, %c0_4] : memref<1x128x128xbf16, #tpu.memory_space<vmem>>, vector<1x128x128xbf16>
    %6 = vector.shape_cast %5 : vector<1x128x128xbf16> to vector<128x128xbf16>
    %cst = arith.constant dense<0.000000e+00> : vector<128x128xf32>
    %7 = tpu.matmul %4, %6, %cst {dimension_numbers = #tpu.dot_dimension_numbers<[1], [0], [0], [1], [0, 0, 1, 1], [], []>} : vector<128x128xbf16>, vector<128x128xbf16>, vector<128x128xf32> -> vector<128x128xf32>
    %8 = vector.extract_strided_slice %7 {offsets = [0, 0], sizes = [128, 64], strides = [1, 1]} : vector<128x128xf32> to vector<128x64xf32>
    %9 = vector.extract_strided_slice %7 {offsets = [0, 64], sizes = [128, 64], strides = [1, 1]} : vector<128x128xf32> to vector<128x64xf32>
    %10 = arith.negf %8 : vector<128x64xf32>
    %11 = math.exp %10 : vector<128x64xf32>
    %cst_5 = arith.constant 1.000000e+00 : f32
    %12 = vector.broadcast %cst_5 : f32 to vector<128x64xf32>
    %13 = arith.addf %12, %11 : vector<128x64xf32>
    %14 = arith.divf %12, %13 : vector<128x64xf32>
    %15 = arith.mulf %8, %14 : vector<128x64xf32>
    %16 = arith.mulf %15, %9 : vector<128x64xf32>
    %17 = arith.truncf %16 : vector<128x64xf32> to vector<128x64xbf16>
    %c0_6 = arith.constant 0 : index
    %c0_7 = arith.constant 0 : index
    %18 = vector.load %arg8[%c0_6, %c0_7] : memref<128x128xf32, #tpu.memory_space<vmem>>, vector<128x128xf32>
    %c0_8 = arith.constant 0 : index
    %c0_9 = arith.constant 0 : index
    %19 = vector.load %arg5[%c0_8, %c0_9] : memref<64x128xbf16, #tpu.memory_space<vmem>>, vector<64x128xbf16>
    %cst_10 = arith.constant dense<0.000000e+00> : vector<128x128xf32>
    %20 = tpu.matmul %17, %19, %cst_10 {dimension_numbers = #tpu.dot_dimension_numbers<[1], [0], [0], [1], [0, 0, 1, 1], [], []>} : vector<128x64xbf16>, vector<64x128xbf16>, vector<128x128xf32> -> vector<128x128xf32>
    %21 = arith.addf %18, %20 : vector<128x128xf32>
    %c0_11 = arith.constant 0 : index
    %c0_12 = arith.constant 0 : index
    %22 = vector.load %arg8[%c0_11, %c0_12] : memref<128x128xf32, #tpu.memory_space<vmem>>, vector<128x128xf32>
    tpu.vector_store %arg8[%c0_11, %c0_12], %21 {strides = array<i32>} : memref<128x128xf32, #tpu.memory_space<vmem>>, vector<128x128xf32>,
    %c0_i32_13 = arith.constant 0 : i32
    %23 = arith.cmpi eq, %arg1, %c0_i32_13 : i32
    %24 = arith.extui %23 : i1 to i32
    %c0_i32_14 = arith.constant 0 : i32
    %25 = arith.cmpi ne, %24, %c0_i32_14 : i32
    scf.if %25 {
      %c0_15 = arith.constant 0 : index
      %c0_16 = arith.constant 0 : index
      %26 = vector.load %arg8[%c0_15, %c0_16] : memref<128x128xf32, #tpu.memory_space<vmem>>, vector<128x128xf32>
      %c0_17 = arith.constant 0 : index
      %c0_18 = arith.constant 0 : index
      %27 = vector.load %arg7[%c0_17, %c0_18] : memref<128x128xf32, #tpu.memory_space<vmem>>, vector<128x128xf32>
      tpu.vector_store %arg7[%c0_17, %c0_18], %26 {strides = array<i32>} : memref<128x128xf32, #tpu.memory_space<vmem>>, vector<128x128xf32>,
    } else {
    }
    return
  }
  func.func @transform_0(%arg0: i32, %arg1: i32) -> (i32, i32) {
    %c0_i32 = arith.constant 0 : i32
    %c0_i32_0 = arith.constant 0 : i32
    return %arg0, %c0_i32 : i32, i32
  }
  func.func @transform_1(%arg0: i32, %arg1: i32) -> (i32, i32) {
    %c0_i32 = arith.constant 0 : i32
    %c0_i32_0 = arith.constant 0 : i32
    %c0_i32_1 = arith.constant 0 : i32
    return %c0_i32, %c0_i32_0 : i32, i32
  }
  func.func @transform_2(%arg0: i32, %arg1: i32) -> (i32, i32, i32) {
    %c0_i32 = arith.constant 0 : i32
    %c0_i32_0 = arith.constant 0 : i32
    %c0_i32_1 = arith.constant 0 : i32
    return %arg1, %c0_i32, %c0_i32_0 : i32, i32, i32
  }
  func.func @transform_3(%arg0: i32, %arg1: i32) -> (i32, i32) {
    %c0_i32 = arith.constant 0 : i32
    %c0_i32_0 = arith.constant 0 : i32
    return %arg1, %c0_i32 : i32, i32
  }
  func.func @transform_4(%arg0: i32, %arg1: i32) -> (i32, i32) {
    %c0_i32 = arith.constant 0 : i32
    %c0_i32_0 = arith.constant 0 : i32
    return %arg0, %c0_i32 : i32, i32
  }
  func.func @transform_5(%arg0: i32, %arg1: i32) -> (i32, i32) {
    %c0_i32 = arith.constant 0 : i32
    %c0_i32_0 = arith.constant 0 : i32
    return %arg0, %c0_i32 : i32, i32
  }
}

</mosaic_0001>

<bundles_post_ra>
// kernel: tpu_custom_call.1
= control target key start
LH: loop header
LB: loop body
LE: loop exit
PB: predicated region body
PF: predicated region fallthrough
CT: control target
= control target key end

     0   :  { %11 = vsyncpa [#allocation4], 0  ;;  %s3299_s0 = inlined_call_operand.vmem [shape: f32[128,128], index: 0, kind: input, shape index: {}]   ;;  %s3300_s1 = inlined_call_operand.vmem [shape: f32[128,4], index: 1, kind: input, shape index: {}]   ;;  %s3301_s2 = inlined_call_operand.hbm [shape: bf16[1,128,128], index: 2, kind: input, shape index: {}]   ;;  %s3302_s3 = inlined_call_operand.hbm [shape: bf16[64,128], index: 3, kind: input, shape index: {}]   ;;  %s3303_s4 = inlined_call_operand.vmem [shape: f32[128,4], index: 4, kind: output, shape index: {0}]   ;;  %s3304_s5 = inlined_call_operand.hbm [shape: f32[128,128], index: 5, kind: output, shape index: {1}]  }
   0x1   :  { %12 = vsyncpa [#allocation7], 0 }
   0x2   :  { %13 = vsyncpa [#allocation5], 0  ;;  %s2154_s18 = smov [#allocation3]  }
   0x3   :  { %s23_s19 = sshll.u32 %s2154_s18, 4  ;;  %s24_s19 = int_to_ptr.vmem [resolvable:$true] %s23_s19 }
   0x4   :  { %s2096_s20 = scalar_lea.vmem %s24_s19, 1024  ;;  %p2101_p1 = scmp.lt.s32.totalorder %s24_s19, %s24_s19 }
   0x5   :  { %p2097_p0 = scmp.ne.s32.totalorder %s24_s19, %s2096_s20  ;;  %p2102_p2 = scmp.lt.s32.totalorder %s2096_s20, %s2096_s20 }
   0x7   :  { %p2103_p3 = por %p2102_p2, %p2101_p1 }
   0x9   :  { %p2104_p4 = pnand %p2103_p3, %p2097_p0 }
   0xb   :  { %2107 = shalt.err (!%p2104_p4)
}
   0xc   :  { %s2155_s21 = smov 64   ;;  %s2156_s22 = smov 4  }
   0xd   :  { %29 = dma.hbm_to_vmem [thread:$0]  %s3301_s2, 1024, %s24_s19, [#allocation4], %s2155_s21, %s2155_s21, %s2156_s22  }
   0xe   :  { %s2157_s25 = smov [#allocation6]  }
   0xf   :  { %s35_s26 = sshll.u32 %s2157_s25, 4  ;;  %s36_s26 = int_to_ptr.vmem [resolvable:$true] %s35_s26 }
  0x10   :  { %s2116_s27 = scalar_lea.vmem %s36_s26, 512  ;;  %p2121_p6 = scmp.lt.s32.totalorder %s36_s26, %s36_s26 }
  0x11   :  { %p2117_p5 = scmp.ne.s32.totalorder %s36_s26, %s2116_s27  ;;  %p2122_p7 = scmp.lt.s32.totalorder %s2116_s27, %s2116_s27 }
  0x13   :  { %p2123_p8 = por %p2122_p7, %p2121_p6 }
  0x15   :  { %p2124_p9 = pnand %p2123_p8, %p2117_p5 }
  0x17   :  { %2127 = shalt.err (!%p2124_p9)
}
  0x18   :  { %41 = dma.hbm_to_vmem [thread:$0]  %s3302_s3, 512, %s36_s26, [#allocation7], %s2155_s21, %s2155_s21, %s2156_s22  }
  0x19   :  { %2148 = dma.done.wait [#allocation4], 1024  }
  0x1a   :  { %2149 = vsyncadd [#allocation4], 4294966272 }
  0x1b   :  { %2150 = dma.done.wait [#allocation7], 512  }
  0x1c   :  { %2151 = vsyncadd [#allocation7], 4294966784  ;;  %v100_v0 = vld [vmem:[%s3300_s1 + $0x78] sm:$0xff]  ;;  %v99_v1 = vld [vmem:[%s3300_s1 + $0x70] sm:$0xff]  ;;  %vm248_vm0 = vcmask 31744   ;;  %vm1498_vm1 = vcmask 523264  }
  0x1d   :  { %1821 = vmatprep.subr.mxu0 %v100_v0  ;;  %v1948_v2 = vld [vmem:[#allocation3 + $0x38] sm:$0xff]   ;;  %v98_v3 = vld [vmem:[%s3300_s1 + $0x68] sm:$0xff]  ;;  %v1949_v4 = vld [vmem:[#allocation3 + $0x30] sm:$0xff]   ;;  %s2158_s14 = smov [#allocation8]  }
  0x1e   :  { %1822 = vmatpush3.msra.mxu0 %v100_v0  ;;  %1877 = vmatprep.subr.bf16.mxu1 %v1948_v2  ;;  %v97_v5 = vld [vmem:[%s3300_s1 + $0x60] sm:$0xff]  ;;  %v1950_v6 = vld [vmem:[#allocation3 + $0x28] sm:$0xff]   ;;  %v96_v7 = vld [vmem:[%s3300_s1 + $0x58] sm:$0xff]  ;;  %s1694_s15 = sshll.u32 %s2158_s14, 4  ;;  %s1695_s15 = int_to_ptr.vmem [resolvable:$true] %s1694_s15 }
  0x1f   :  { %1823 = vmatprep.subr.mxu0 %v99_v1  ;;  %1878 = vmatpush3.bf16.msra.mxu1 %v1948_v2  ;;  %v95_v8 = vld [vmem:[%s3300_s1 + $0x50] sm:$0xff]  ;;  %v1951_v9 = vld [vmem:[#allocation3 + $0x20] sm:$0xff]   ;;  %v94_v10 = vld [vmem:[%s3300_s1 + $0x48] sm:$0xff]  ;;  %s2128_s16 = scalar_lea.vmem %s1695_s15, 2048  ;;  %p2133_p11 = scmp.lt.s32.totalorder %s1695_s15, %s1695_s15 }
  0x20   :  { %1824 = vmatpush3.msra.mxu0 %v99_v1  ;;  %1879 = vmatprep.subr.bf16.mxu1 %v1949_v4  ;;  %v93_v11 = vld [vmem:[%s3300_s1 + $0x40] sm:$0xff]  ;;  %v1952_v12 = vld [vmem:[#allocation3 + $0x18] sm:$0xff]   ;;  %v50_v14 = vld [vmem:[%s3299_s0 + $0x8] sm:$0xff]  ;;  %p2129_p10 = scmp.ne.s32.totalorder %s1695_s15, %s2128_s16  ;;  %p2134_p12 = scmp.lt.s32.totalorder %s2128_s16, %s2128_s16 }
  0x21   :  { %1825 = vmatprep.subr.mxu0 %v98_v3  ;;  %v49_v13 = vld [vmem:[%s3299_s0] sm:$0xff]  ;;  %v92_v15 = vld [vmem:[%s3300_s1 + $0x38] sm:$0xff]  ;;  %v91_v17 = vld [vmem:[%s3300_s1 + $0x30] sm:$0xff] }
  0x22   :  { %1826 = vmatpush3.msra.mxu0 %v98_v3  ;;  %1853 = vmatprep.mubr.f32.mxu0 %v49_v13  ;;  %v1081_v16 = vpack.c.bf16 %v50_v14, %v49_v13  ;;  %v90_v18 = vld [vmem:[%s3300_s1 + $0x28] sm:$0xff]  ;;  %v1953_v19 = vld [vmem:[#allocation3 + $0x10] sm:$0xff]   ;;  %v89_v20 = vld [vmem:[%s3300_s1 + $0x20] sm:$0xff]  ;;  %p2135_p13 = por %p2134_p12, %p2133_p11 }
  0x23   :  { %1827 = vmatprep.subr.mxu0 %v97_v5  ;;  %1880 = vmatpush3.bf16.msra.mxu1 %v1949_v4  ;;  %v1954_v21 = vld [vmem:[#allocation3 + $0x8] sm:$0xff]   ;;  %v88_v22 = vld [vmem:[%s3300_s1 + $0x18] sm:$0xff]  ;;  %v87_v23 = vld [vmem:[%s3300_s1 + $0x10] sm:$0xff] }
  0x24   :  { %1828 = vmatpush3.msra.mxu0 %v97_v5  ;;  %1881 = vmatprep.subr.bf16.mxu1 %v1950_v6  ;;  %v1955_v24 = vld [vmem:[#allocation3] sm:$0xff]   ;;  %v86_v25 = vld [vmem:[%s3300_s1 + $0x8] sm:$0xff]  ;;  %v51_v27 = vld [vmem:[%s3299_s0 + $0x10] sm:$0xff]  ;;  %p2136_p0 = pnand %p2135_p13, %p2129_p10 }
  0x25   :  { %1829 = vmatprep.subr.mxu0 %v96_v7  ;;  %1893 = vmatprep.mubr.bf16.mxu1 %v1081_v16  ;;  %v85_v26 = vld [vmem:[%s3300_s1] sm:$0xff]  ;;  %v52_v28 = vld [vmem:[%s3299_s0 + $0x18] sm:$0xff]  ;;  %v54_v30 = vld [vmem:[%s3299_s0 + $0x28] sm:$0xff] }
  0x26   :  { %1830 = vmatpush3.msra.mxu0 %v96_v7  ;;  %v53_v29 = vld [vmem:[%s3299_s0 + $0x20] sm:$0xff]  ;;  %v1082_v31 = vpack.c.bf16 %v52_v28, %v51_v27  ;;  %v55_v33 = vld [vmem:[%s3299_s0 + $0x30] sm:$0xff]  ;;  %v56_v34 = vld [vmem:[%s3299_s0 + $0x38] sm:$0xff] }
  0x27   :  { %1831 = vmatprep.subr.mxu0 %v95_v8  ;;  %1882 = vmatpush3.bf16.msra.mxu1 %v1950_v6  ;;  %v1083_v32 = vpack.c.bf16 %v54_v30, %v53_v29  ;;  %v57_v35 = vld [vmem:[%s3299_s0 + $0x40] sm:$0xff]  ;;  %v58_v36 = vld [vmem:[%s3299_s0 + $0x48] sm:$0xff]  ;;  %v1084_v37 = vpack.c.bf16 %v56_v34, %v55_v33  ;;  %v59_v39 = vld [vmem:[%s3299_s0 + $0x50] sm:$0xff] }
  0x28   :  { %1832 = vmatpush3.msra.mxu0 %v95_v8  ;;  %1883 = vmatprep.subr.bf16.mxu1 %v1951_v9  ;;  %v1085_v38 = vpack.c.bf16 %v58_v36, %v57_v35  ;;  %v60_v40 = vld [vmem:[%s3299_s0 + $0x58] sm:$0xff]  ;;  %v61_v42 = vld [vmem:[%s3299_s0 + $0x60] sm:$0xff]  ;;  %v62_v43 = vld [vmem:[%s3299_s0 + $0x68] sm:$0xff] }
  0x29   :  { %1833 = vmatprep.subr.mxu0 %v94_v10  ;;  %v1086_v41 = vpack.c.bf16 %v60_v40, %v59_v39  ;;  %v63_v44 = vld [vmem:[%s3299_s0 + $0x70] sm:$0xff]  ;;  %v64_v45 = vld [vmem:[%s3299_s0 + $0x78] sm:$0xff]  ;;  %v1087_v46 = vpack.c.bf16 %v62_v43, %v61_v42  ;;  %v1958_v61 = vld [vmem:[#allocation6 + $0x8] sm:$0xff]  }
  0x2a   :  { %1834 = vmatpush3.msra.mxu0 %v94_v10  ;;  %v1088_v47 = vpack.c.bf16 %v64_v45, %v63_v44  ;;  %v1956_v59 = vld [vmem:[#allocation6 + $0x18] sm:$0xff]   ;;  %v1957_v60 = vld [vmem:[#allocation6 + $0x10] sm:$0xff]   ;;  %v1959_v62 = vld [vmem:[#allocation6] sm:$0xff]  }
  0x2b   :  { %1835 = vmatprep.subr.mxu0 %v93_v11  ;;  %1884 = vmatpush3.bf16.msra.mxu1 %v1951_v9 }
  0x2c   :  { %1836 = vmatpush3.msra.mxu0 %v93_v11  ;;  %1885 = vmatprep.subr.bf16.mxu1 %v1952_v12 }
  0x2d   :  { %1837 = vmatprep.subr.mxu0 %v92_v15 }
  0x2e   :  { %1838 = vmatpush3.msra.mxu0 %v92_v15 }
  0x2f   :  { %1839 = vmatprep.subr.mxu0 %v91_v17  ;;  %1886 = vmatpush3.bf16.msra.mxu1 %v1952_v12 }
  0x30   :  { %1840 = vmatpush3.msra.mxu0 %v91_v17  ;;  %1887 = vmatprep.subr.bf16.mxu1 %v1953_v19 }
  0x31   :  { %1841 = vmatprep.subr.mxu0 %v90_v18 }
  0x32   :  { %1842 = vmatpush3.msra.mxu0 %v90_v18 }
  0x33   :  { %1843 = vmatprep.subr.mxu0 %v89_v20  ;;  %1888 = vmatpush3.bf16.msra.mxu1 %v1953_v19 }
  0x34   :  { %1844 = vmatpush3.msra.mxu0 %v89_v20  ;;  %1889 = vmatprep.subr.bf16.mxu1 %v1954_v21 }
  0x35   :  { %1845 = vmatprep.subr.mxu0 %v88_v22 }
  0x36   :  { %1846 = vmatpush3.msra.mxu0 %v88_v22 }
  0x37   :  { %1847 = vmatprep.subr.mxu0 %v87_v23  ;;  %1890 = vmatpush3.bf16.msra.mxu1 %v1954_v21 }
  0x38   :  { %1848 = vmatpush3.msra.mxu0 %v87_v23  ;;  %1891 = vmatprep.subr.bf16.mxu1 %v1955_v24 }
  0x39   :  { %1849 = vmatprep.subr.mxu0 %v86_v25 }
  0x3a   :  { %1850 = vmatpush3.msra.mxu0 %v86_v25 }
  0x3b   :  { %1851 = vmatprep.subr.mxu0 %v85_v26  ;;  %1892 = vmatpush3.bf16.msra.mxu1 %v1955_v24 }
  0x3c   :  { %1852 = vmatpush3.msra.mxu0 %v85_v26  ;;  %1933 = vmatprep.subr.bf16.mxu1 %v1956_v59 }
  0x3d   :  { %1854 = vmatmul.mubr.f32.vlgmr.msra.gmra.mxu0 %v50_v14  ;;  %1909 = vmatprep.subr.bf16.mxu0 %v1956_v59 }
  0x3e   :  { %1856 = vmatprep.mubr.f32.mxu0 %v51_v27  ;;  %1894 = vmatmul.mubr.bf16.vlgmr.msra.gmra.mxu1 %v1082_v31 }
  0x3f   :  { %1897 = vmatprep.mubr.bf16.mxu1 %v1083_v32  ;;  %1910 = vmatpush3.bf16.msra.mxu0 %v1956_v59 }
  0x40   :  { %1937 = vmatpush3.bf16.msra.mxu1 %v1956_v59  ;;  %1911 = vmatprep.subr.bf16.mxu0 %v1957_v60 }
  0x41   :  { %1857 = vmatmul.mubr.f32.gmra.mxu0 %v52_v28  ;;  %1934 = vmatprep.subr.bf16.mxu1 %v1957_v60 }
  0x42   :  { %1859 = vmatprep.mubr.f32.mxu0 %v53_v29 }
  0x43   :  { %1912 = vmatpush3.bf16.msra.mxu0 %v1957_v60 }
  0x44   :  { %1938 = vmatpush3.bf16.msra.mxu1 %v1957_v60  ;;  %1913 = vmatprep.subr.bf16.mxu0 %v1958_v61 }
  0x45   :  { %1860 = vmatmul.mubr.f32.gmra.mxu0 %v54_v30  ;;  %1935 = vmatprep.subr.bf16.mxu1 %v1958_v61 }
  0x46   :  { %1862 = vmatprep.mubr.f32.mxu0 %v55_v33  ;;  %1898 = vmatmul.mubr.bf16.gmra.mxu1 %v1084_v37 }
  0x47   :  { %1901 = vmatprep.mubr.bf16.mxu1 %v1085_v38  ;;  %1914 = vmatpush3.bf16.msra.mxu0 %v1958_v61 }
  0x48   :  { %1939 = vmatpush3.bf16.msra.mxu1 %v1958_v61  ;;  %1915 = vmatprep.subr.bf16.mxu0 %v1959_v62 }
  0x49   :  { %1863 = vmatmul.mubr.f32.gmra.mxu0 %v56_v34  ;;  %1936 = vmatprep.subr.bf16.mxu1 %v1959_v62 }
  0x4a   :  { %1865 = vmatprep.mubr.f32.mxu0 %v57_v35 }
  0x4b   :  { %1916 = vmatpush3.bf16.msra.mxu0 %v1959_v62 }
  0x4c   :  { %1940 = vmatpush3.bf16.msra.mxu1 %v1959_v62 }
  0x4d   :  { %1866 = vmatmul.mubr.f32.gmra.mxu0 %v58_v36 }
  0x4e   :  { %1868 = vmatprep.mubr.f32.mxu0 %v59_v39  ;;  %1902 = vmatmul.mubr.bf16.gmra.mxu1 %v1086_v41 }
  0x4f   :  { %1905 = vmatprep.mubr.bf16.mxu1 %v1087_v46 }
  0x51   :  { %1869 = vmatmul.mubr.f32.gmra.mxu0 %v60_v40 }
  0x52   :  { %1871 = vmatprep.mubr.f32.mxu0 %v61_v42 }
  0x55   :  { %1872 = vmatmul.mubr.f32.gmra.mxu0 %v62_v43 }
  0x56   :  { %1874 = vmatprep.mubr.f32.mxu0 %v63_v44  ;;  %1906 = vmatmul.mubr.bf16.gmra.mxu1 %v1088_v47 }
  0x59   :  { %1875 = vmatmul.mubr.f32.gmra.mxu0 %v64_v45 }
  0xfd   :  { %v2297_v48 = vpop.f32.mrf.mxu0 }
  0xfe   :  { %v252_v49 = vsel %vm248_vm0, %v2297_v48, -inf  ;;  %v2307_v53 = vpop.f32.mrf.mxu1 }
  0xff   :  { %253 = vmax.xlane.f32.xlu0 %v252_v49  ;;  %v2301_v50 = vpop.f32.mrf.mxu0  ;;  %v1735_v2 = vmul.f32 -1.442695, %v2307_v53 }
 0x100   :  { %v2309_v54 = vpop.f32.mrf.mxu1  ;;  %v249_v56 = vsel %vm248_vm0, %v2301_v50, -inf }
 0x101   :  { %v2303_v51 = vpop.f32.mrf.mxu0  ;;  %1960 = vpow2.f32 %v1735_v2  ;;  %v1733_v28 = vmul.f32 -1.442695, %v2309_v54 }
 0x102   :  { %v258_v52 = vsel %vm248_vm0, %v2303_v51, -inf  ;;  %v1896_v55 = vpop.f32.mrf.mxu1 }
 0x103   :  { %259 = vmax.xlane.f32.xlu1 %v258_v52  ;;  %v2316_v57 = vpop.f32.mrf.mxu0  ;;  %v1736_v4 = vmul.f32 -1.442695, %v1896_v55 }
 0x104   :  { %v255_v58 = vsel %vm248_vm0, %v2316_v57, -inf  ;;  %v2320_v63 = vpop.f32.mrf.mxu1 }
 0x105   :  { %v2326_v0 = vpop.f32.mrf.mxu0  ;;  %1962 = vpow2.f32 %v1736_v4  ;;  %v1734_v29 = vmul.f32 -1.442695, %v2320_v63 }
 0x106   :  { %v264_v5 = vsel %vm248_vm0, %v2326_v0, -inf  ;;  %v2339_v8 = vpop.f32.mrf.mxu1 }
 0x107   :  { %v2328_v1 = vpop.f32.mrf.mxu0 }
 0x108   :  { %v261_v3 = vsel %vm248_vm0, %v2328_v1, -inf  ;;  %v2341_v11 = vpop.f32.mrf.mxu1 }
 0x109   :  { %v2335_v6 = vpop.f32.mrf.mxu0  ;;  %v1737_v60 = vmul.f32 -1.442695, %v2341_v11 }
 0x10a   :  { %3334 = vst [vmem:[#allocation12_spill] sm:$0xff] %v2335_v6  ;;  %v270_v7 = vsel %vm248_vm0, %v2335_v6, -inf  ;;  %v2343_v14 = vpop.f32.mrf.mxu1 }
 0x10b   :  { %v2356_v27 = vpop.f32.mrf.mxu0 }
 0x10c   :  { %v2347_v15 = vpop.f32.mrf.mxu1  ;;  %3335 = vst [vmem:[#allocation13_spill] sm:$0xff] %v2356_v27  ;;  %v267_v30 = vsel %vm248_vm0, %v2356_v27, -inf }
 0x10d   :  { %v2362_v31 = vpop.f32.mrf.mxu0  ;;  %v1738_v62 = vmul.f32 -1.442695, %v2347_v15 }
 0x10e   :  { %v1961_v9 = vpop.eup %1960  ;;  %3336 = vst [vmem:[#allocation14_spill] sm:$0xff] %v2362_v31  ;;  %v276_v32 = vsel %vm248_vm0, %v2362_v31, -inf  ;;  %v2366_v37 = vpop.f32.mrf.mxu1 }
 0x10f   :  { %v1300_v12 = vadd.f32 1.0, %v1961_v9  ;;  %v2378_v43 = vpop.f32.mrf.mxu0 }
 0x110   :  { %v2370_v38 = vpop.f32.mrf.mxu1  ;;  %3337 = vst [vmem:[#allocation15_spill] sm:$0xff] %v2378_v43 }
 0x111   :  { %1964 = vrcp.f32 %v1300_v12  ;;  %v2382_v49 = vpop.f32.mrf.mxu0 }
 0x112   :  { %v1963_v10 = vpop.eup %1962  ;;  %3338 = vst [vmem:[#allocation16_spill] sm:$0xff] %v2382_v49  ;;  %v282_v2 = vsel %vm248_vm0, %v2382_v49, -inf  ;;  %v2408_v12 = vpop.f32.mrf.mxu1 }
 0x113   :  { %v1301_v13 = vadd.f32 1.0, %v1963_v10 }
 0x114   :  { %1384 = vrot.lane.b32.xlu1 %v1896_v55, %s2155_s21 }
 0x115   :  { %1382 = vrot.lane.b32.xlu0 %v2307_v53, %s2155_s21  ;;  %1966 = vrcp.f32 %v1301_v13 }
 0x116   :  { %1968 = vpow2.f32 %v1733_v28 }
 0x117   :  { %1970 = vpow2.f32 %v1734_v29 }
 0x11e   :  { %v1965_v17 = vpop.eup %1964 }
 0x11f   :  { %v1348_v21 = vmul.f32 %v1965_v17, %v2307_v53  ;;  %v2410_v17 = vpop.f32.mrf.mxu1 }
 0x122   :  { %v1967_v18 = vpop.eup %1966 }
 0x123   :  { %v1349_v22 = vmul.f32 %v1967_v18, %v1896_v55  ;;  %v1969_v33 = vpop.eup %1968  ;;  %v2414_v18 = vpop.f32.mrf.mxu1 }
 0x124   :  { %v1971_v34 = vpop.eup %1970  ;;  %v1298_v35 = vadd.f32 1.0, %v1969_v33 }
 0x125   :  { %v1299_v36 = vadd.f32 1.0, %v1971_v34 }
 0x126   :  { %1972 = vrcp.f32 %v1298_v35  ;;  %v246_v35 = vlaneseq }
 0x127   :  { %1974 = vrcp.f32 %v1299_v36 }
 0x128   :  { %1976 = vpow2.f32 %v1737_v60  ;;  %v2431_v36 = vand.u32 127, %v246_v35 }
 0x129   :  { %1978 = vpow2.f32 %v1738_v62 }
 0x133   :  { %v1973_v40 = vpop.eup %1972 }
 0x134   :  { %250 = vmax.xlane.f32.xlu0 %v249_v56  ;;  %v1975_v41 = vpop.eup %1974  ;;  %v1346_v45 = vmul.f32 %v1973_v40, %v2309_v54  ;;  %v2384_v56 = vpop.f32.mrf.mxu0 }
 0x135   :  { %v1347_v46 = vmul.f32 %v1975_v41, %v2320_v63  ;;  %3339 = vst [vmem:[#allocation17_spill] sm:$0xff] %v2384_v56  ;;  %v279_v61 = vsel %vm248_vm0, %v2384_v56, -inf }
 0x138   :  { %256 = vmax.xlane.f32.xlu1 %v255_v58  ;;  %v2388_v58 = vpop.f32.mrf.mxu0 }
 0x139   :  { %3340 = vst [vmem:[#allocation18_spill] sm:$0xff] %v2388_v58 }
 0x13a   :  { %v2390_v59 = vpop.f32.mrf.mxu0 }
 0x13b   :  { %3341 = vst [vmem:[#allocation19_spill] sm:$0xff] %v2390_v59 }
 0x149   :  { %1380 = vrot.lane.b32.xlu1 %v2320_v63, %s2155_s21  ;;  %v2398_v63 = vpop.f32.mrf.mxu0 }
 0x14a   :  { %1378 = vrot.lane.b32.xlu0 %v2309_v54, %s2155_s21  ;;  %v273_v54 = vsel %vm248_vm0, %v2378_v43, -inf  ;;  %3342 = vst [vmem:[#allocation20_spill] sm:$0xff] %v2398_v63 }
 0x14b   :  { %v2404_v4 = vpop.f32.mrf.mxu0 }
 0x169   :  { %262 = vmax.xlane.f32.xlu0 %v261_v3  ;;  %v285_v3 = vsel %vm248_vm0, %v2390_v59, -inf }
 0x16d   :  { %265 = vmax.xlane.f32.xlu1 %v264_v5  ;;  %v291_v5 = vsel %vm248_vm0, %v2404_v4, -inf }
 0x171   :  { %271 = vmax.xlane.f32.xlu1 %v270_v7  ;;  %v1977_v7 = vpop.eup %1976 }
 0x172   :  { %v1979_v9 = vpop.eup %1978  ;;  %v1302_v10 = vadd.f32 1.0, %v1977_v7 }
 0x173   :  { %v1303_v13 = vadd.f32 1.0, %v1979_v9 }
 0x174   :  { %1980 = vrcp.f32 %v1302_v10  ;;  %v1741_v10 = vmul.f32 -1.442695, %v2370_v38 }
 0x175   :  { %1982 = vrcp.f32 %v1303_v13  ;;  %v1744_v13 = vmul.f32 -1.442695, %v2408_v12 }
 0x176   :  { %1984 = vpow2.f32 %v1741_v10 }
 0x177   :  { %1986 = vpow2.f32 %v1744_v13 }
 0x17f   :  { %1386 = vrot.lane.b32.xlu0 %v2341_v11, %s2155_s21 }
 0x182   :  { %1388 = vrot.lane.b32.xlu1 %v2347_v15, %s2155_s21 }
 0x188   :  { %v2351_v16 = vpop.xlane.xlu0 %253 }
 0x189   :  { %vm298_vm6 = vcmp.eq.f32.partialorder %v2297_v48, %v2351_v16 }
 0x18a   :  { %v314_v9 = vsel %vm298_vm6, %v2431_v36, 4 }
 0x18c   :  { %v2353_v19 = vpop.xlane.xlu1 %259  ;;  %v1383_v20 = vpop.permute.xlu0 %1382 }
 0x18d   :  { %v1428_v24 = vmul.f32 %v1383_v20, %v1348_v21  ;;  %v2418_v20 = vpop.f32.mrf.mxu1  ;;  %vm300_vm7 = vcmp.eq.f32.partialorder %v2303_v51, %v2353_v19 }
 0x18f   :  { %v2464_v60 = vpop.f32.mrf.mxu1 }
 0x190   :  { %v1385_v23 = vpop.permute.xlu1 %1384 }
 0x191   :  { %v1429_v25 = vmul.f32 %v1385_v23, %v1349_v22  ;;  %v1981_v23 = vpop.eup %1980 }
 0x192   :  { %v1350_v28 = vmul.f32 %v1981_v23, %v2341_v11  ;;  %v1743_v23 = vmul.f32 -1.442695, %v2366_v37 }
 0x193   :  { %v1443_v26 = vpack.c.bf16 %v1429_v25, %v1428_v24  ;;  %v1983_v24 = vpop.eup %1982 }
 0x194   :  { %v1351_v29 = vmul.f32 %v1983_v24, %v2347_v15  ;;  %v2489_v24 = vsel %vm248_vm0, %v314_v9, 2147483647 }
 0x195   :  { %v346_v16 = vshra.s32 %v2489_v24, 16 }
 0x19e   :  { %268 = vmax.xlane.f32.xlu0 %v267_v30 }
 0x1a6   :  { %277 = vmax.xlane.f32.xlu1 %v276_v32 }
 0x1b4   :  { %1398 = vrot.lane.b32.xlu0 %v2366_v37, %s2155_s21 }
 0x1b7   :  { %1394 = vrot.lane.b32.xlu1 %v2370_v38, %s2155_s21 }
 0x1bd   :  { %v2374_v39 = vpop.xlane.xlu0 %250 }
 0x1be   :  { %vm297_vm2 = vcmp.eq.f32.partialorder %v2301_v50, %v2374_v39 }
 0x1bf   :  { %v313_v40 = vsel %vm297_vm2, %v2431_v36, 4 }
 0x1c0   :  { %v2437_v11 = vsel %vm248_vm0, %v313_v40, 2147483647 }
 0x1c1   :  { %v2376_v42 = vpop.xlane.xlu1 %256  ;;  %v1379_v44 = vpop.permute.xlu0 %1378  ;;  %v331_v41 = vshra.s32 %v2437_v11, 16 }
 0x1c2   :  { %v1426_v52 = vmul.f32 %v1379_v44, %v1346_v45  ;;  %vm299_vm3 = vcmp.eq.f32.partialorder %v2316_v57, %v2376_v42  ;;  %v288_v42 = vsel %vm248_vm0, %v2388_v58, -inf }
 0x1c3   :  { %v315_v15 = vsel %vm299_vm3, %v2431_v36, 4  ;;  %v2446_v45 = vcvt.s32.f32 %v331_v41 }
 0x1c4   :  { %v2443_v44 = vsel %vm248_vm0, %v315_v15, 2147483647  ;;  %v1985_v15 = vpop.eup %1984 }
 0x1c5   :  { %v1381_v47 = vpop.permute.xlu1 %1380  ;;  %v1987_v41 = vpop.eup %1986 }
 0x1c6   :  { %v1427_v53 = vmul.f32 %v1381_v47, %v1347_v46  ;;  %v361_v46 = vshra.s32 %v2443_v44, 16 }
 0x1c8   :  { %v1442_v55 = vpack.c.bf16 %v1427_v53, %v1426_v52  ;;  %v2455_v52 = vcvt.s32.f32 %v361_v46 }
 0x1ca   :  { %1917 = vmatprep.mubr.msk.bf16.mxu0 %vm1498_vm1, %v1442_v55  ;;  %v294_v55 = vsel %vm248_vm0, %v2398_v63, -inf }
 0x1cb   :  { %1918 = vmatmul.mubr.msk.bf16.vlgmr.msra.gmra.mxu0 %vm1498_vm1, %v1443_v26 }
 0x1d3   :  { %274 = vmax.xlane.f32.xlu0 %v273_v54 }
 0x1d7   :  { %280 = vmax.xlane.f32.xlu0 %v279_v61  ;;  %v2466_v61 = vpop.f32.mrf.mxu1 }
 0x1db   :  { %283 = vmax.xlane.f32.xlu1 %v282_v2  ;;  %286 = vmax.xlane.f32.xlu0 %v285_v3 }
 0x1df   :  { %292 = vmax.xlane.f32.xlu0 %v291_v5 }
 0x1ec   :  { %1400 = vrot.lane.b32.xlu1 %v2408_v12, %s2155_s21 }
 0x1f0   :  { %1396 = vrot.lane.b32.xlu1 %v2410_v17, %s2155_s21 }
 0x1f2   :  { %v263_v21 = vpop.xlane.xlu0 %262 }
 0x1f3   :  { %vm301_vm4 = vcmp.eq.f32.partialorder %v2328_v1, %v263_v21  ;;  %v1742_v21 = vmul.f32 -1.442695, %v2410_v17 }
 0x1f4   :  { %v317_v39 = vsel %vm301_vm4, %v2431_v36, 4 }
 0x1f5   :  { %1402 = vrot.lane.b32.xlu0 %v2418_v20, %s2155_s21  ;;  %v2452_v47 = vsel %vm248_vm0, %v317_v39, 2147483647  ;;  %1988 = vpow2.f32 %v1742_v21 }
 0x1f6   :  { %v2422_v22 = vpop.xlane.xlu1 %265  ;;  %v1387_v26 = vpop.permute.xlu0 %1386  ;;  %v391_v53 = vshra.s32 %v2452_v47, 16  ;;  %1990 = vpow2.f32 %v1743_v23 }
 0x1f7   :  { %v1430_v32 = vmul.f32 %v1387_v26, %v1350_v28  ;;  %v316_v26 = vsel %vm300_vm7, %v2431_v36, 4  ;;  %vm302_vm8 = vcmp.eq.f32.partialorder %v2326_v0, %v2422_v22 }
 0x1f8   :  { %v2461_v54 = vcvt.s32.f32 %v391_v53  ;;  %v2496_v19 = vsel %vm248_vm0, %v316_v26, 2147483647  ;;  %v318_v28 = vsel %vm302_vm8, %v2431_v36, 4 }
 0x1fa   :  { %v2424_v25 = vpop.xlane.xlu1 %271 }
 0x1fb   :  { %vm304_vm9 = vcmp.eq.f32.partialorder %v2335_v6, %v2424_v25 }
 0x1fc   :  { %v320_v22 = vsel %vm304_vm9, %v2431_v36, 4 }
 0x1fd   :  { %v2514_v25 = vsel %vm248_vm0, %v320_v22, 2147483647 }
 0x1fe   :  { %v1389_v30 = vpop.permute.xlu1 %1388  ;;  %v436_v46 = vshra.s32 %v2514_v25, 16 }
 0x1ff   :  { %v1431_v33 = vmul.f32 %v1389_v30, %v1351_v29  ;;  %v2501_v30 = vcvt.s32.f32 %v346_v16 }
 0x200   :  { %v2525_v9 = vcvt.s32.f32 %v436_v46 }
 0x201   :  { %v1444_v34 = vpack.c.bf16 %v1431_v33, %v1430_v32  ;;  %v376_v32 = vshra.s32 %v2496_v19, 16  ;;  %v2505_v33 = vsel %vm248_vm0, %v318_v28, 2147483647 }
 0x202   :  { %v406_v35 = vshra.s32 %v2505_v33, 16 }
 0x203   :  { %1921 = vmatprep.mubr.msk.bf16.mxu0 %vm1498_vm1, %v1444_v34  ;;  %v2510_v34 = vcvt.s32.f32 %v376_v32 }
 0x204   :  { %v2518_v39 = vcvt.s32.f32 %v406_v35 }
 0x214   :  { %289 = vmax.xlane.f32.xlu1 %v288_v42  ;;  %334 = vmin.xlane.f32.xlu0 %v2446_v45  ;;  %v1989_v42 = vpop.eup %1988 }
 0x218   :  { %295 = vmax.xlane.f32.xlu1 %v294_v55  ;;  %364 = vmin.xlane.f32.xlu0 %v2455_v52  ;;  %v1991_v55 = vpop.eup %1990 }
 0x219   :  { %v1308_v13 = vadd.f32 1.0, %v1991_v55 }
 0x21c   :  { %394 = vmin.xlane.f32.xlu0 %v2461_v54 }
 0x227   :  { %v269_v62 = vpop.xlane.xlu0 %268 }
 0x228   :  { %vm303_vm5 = vcmp.eq.f32.partialorder %v2356_v27, %v269_v62  ;;  %v1306_v62 = vadd.f32 1.0, %v1985_v15 }
 0x229   :  { %v319_v2 = vsel %vm303_vm5, %v2431_v36, 4  ;;  %1404 = vrot.lane.b32.xlu1 %v2466_v61, %s2155_s21 }
 0x22a   :  { %v2473_v3 = vsel %vm248_vm0, %v319_v2, 2147483647  ;;  %v1309_v2 = vadd.f32 1.0, %v1987_v41  ;;  %1992 = vrcp.f32 %v1306_v62 }
 0x22b   :  { %v421_v5 = vshra.s32 %v2473_v3, 16  ;;  %v1399_v21 = vpop.permute.xlu0 %1398 }
 0x22c   :  { %1994 = vrcp.f32 %v1309_v2 }
 0x22d   :  { %v2476_v7 = vcvt.s32.f32 %v421_v5  ;;  %v1307_v5 = vadd.f32 1.0, %v1989_v42 }
 0x22f   :  { %424 = vmin.xlane.f32.xlu0 %v2476_v7  ;;  %v278_v29 = vpop.xlane.xlu1 %277  ;;  %1996 = vrcp.f32 %v1307_v5 }
 0x230   :  { %vm306_vm10 = vcmp.eq.f32.partialorder %v2362_v31, %v278_v29  ;;  %1998 = vrcp.f32 %v1308_v13 }
 0x231   :  { %v322_v40 = vsel %vm306_vm10, %v2431_v36, 4 }
 0x232   :  { %v2522_v53 = vsel %vm248_vm0, %v322_v40, 2147483647 }
 0x233   :  { %v466_v10 = vshra.s32 %v2522_v53, 16  ;;  %v1395_v29 = vpop.permute.xlu1 %1394 }
 0x235   :  { %v2529_v23 = vcvt.s32.f32 %v466_v10 }
 0x237   :  { %v1993_v55 = vpop.eup %1992 }
 0x239   :  { %v1995_v10 = vpop.eup %1994 }
 0x24d   :  { %349 = vmin.xlane.f32.xlu1 %v2501_v30 }
 0x251   :  { %379 = vmin.xlane.f32.xlu1 %v2510_v34 }
 0x255   :  { %409 = vmin.xlane.f32.xlu1 %v2518_v39 }
 0x259   :  { %439 = vmin.xlane.f32.xlu1 %v2525_v9 }
 0x25c   :  { %v275_v26 = vpop.xlane.xlu0 %274 }
 0x25d   :  { %vm305_vm11 = vcmp.eq.f32.partialorder %v2378_v43, %v275_v26  ;;  %469 = vmin.xlane.f32.xlu1 %v2529_v23 }
 0x25e   :  { %v321_v16 = vsel %vm305_vm11, %v2431_v36, 4 }
 0x25f   :  { %v2535_v28 = vsel %vm248_vm0, %v321_v16, 2147483647  ;;  %v1997_v16 = vpop.eup %1996 }
 0x260   :  { %v281_v32 = vpop.xlane.xlu0 %280  ;;  %v451_v22 = vshra.s32 %v2535_v28, 16  ;;  %v1355_v43 = vmul.f32 %v1997_v16, %v2410_v17  ;;  %v1746_v17 = vmul.f32 -1.442695, %v2466_v61 }
 0x261   :  { %vm307_vm12 = vcmp.eq.f32.partialorder %v2384_v56, %v281_v32 }
 0x262   :  { %v323_v35 = vsel %vm307_vm12, %v2431_v36, 4  ;;  %v2540_v40 = vcvt.s32.f32 %v451_v22 }
 0x263   :  { %v2543_v15 = vsel %vm248_vm0, %v323_v35, 2147483647 }
 0x264   :  { %v284_v41 = vpop.xlane.xlu1 %283  ;;  %v287_v46 = vpop.xlane.xlu0 %286  ;;  %454 = vmin.xlane.f32.xlu0 %v2540_v40  ;;  %v481_v42 = vshra.s32 %v2543_v15, 16 }
 0x265   :  { %vm308_vm13 = vcmp.eq.f32.partialorder %v2382_v49, %v284_v41  ;;  %vm309_vm14 = vcmp.eq.f32.partialorder %v2390_v59, %v287_v46  ;;  %v1999_v46 = vpop.eup %1998  ;;  %v1354_v49 = vmul.f32 %v1993_v55, %v2370_v38 }
 0x266   :  { %v324_v62 = vsel %vm308_vm13, %v2431_v36, 4  ;;  %v325_v2 = vsel %vm309_vm14, %v2431_v36, 4  ;;  %v2551_v5 = vcvt.s32.f32 %v481_v42  ;;  %v1357_v42 = vmul.f32 %v1995_v10, %v2408_v12 }
 0x267   :  { %v2554_v13 = vsel %vm248_vm0, %v324_v62, 2147483647  ;;  %v2557_v26 = vsel %vm248_vm0, %v325_v2, 2147483647  ;;  %v1356_v31 = vmul.f32 %v1999_v46, %v2366_v37  ;;  %v1434_v10 = vmul.f32 %v1395_v29, %v1354_v49 }
 0x268   :  { %v1401_v32 = vpop.permute.xlu1 %1400  ;;  %484 = vmin.xlane.f32.xlu0 %v2551_v5  ;;  %v293_v22 = vpop.xlane.xlu0 %292  ;;  %v496_v35 = vshra.s32 %v2554_v13, 16  ;;  %v511_v41 = vshra.s32 %v2557_v26, 16  ;;  %v1745_v37 = vmul.f32 -1.442695, %v2418_v20 }
 0x269   :  { %vm311_vm15 = vcmp.eq.f32.partialorder %v2404_v4, %v293_v22  ;;  %v1437_v27 = vmul.f32 %v1401_v32, %v1357_v42 }
 0x26a   :  { %v327_v62 = vsel %vm311_vm15, %v2431_v36, 4  ;;  %v2565_v59 = vcvt.s32.f32 %v496_v35  ;;  %v2567_v2 = vcvt.s32.f32 %v511_v41  ;;  %v1436_v35 = vmul.f32 %v1399_v21, %v1356_v31 }
 0x26b   :  { %v2571_v56 = vsel %vm248_vm0, %v327_v62, 2147483647  ;;  %2000 = vpow2.f32 %v1745_v37  ;;  %v330_v62 = vand.u32 65535, %v2437_v11  ;;  %v360_v11 = vand.u32 65535, %v2443_v44 }
 0x26c   :  { %v1397_v6 = vpop.permute.xlu1 %1396  ;;  %499 = vmin.xlane.f32.xlu1 %v2565_v59  ;;  %514 = vmin.xlane.f32.xlu0 %v2567_v2  ;;  %v541_v12 = vshra.s32 %v2571_v56, 16  ;;  %v1447_v55 = vpack.c.bf16 %v1437_v27, %v1436_v35  ;;  %2002 = vpow2.f32 %v1746_v17  ;;  %v1403_v32 = vpop.permute.xlu0 %1402 }
 0x26d   :  { %v1435_v22 = vmul.f32 %v1397_v6, %v1355_v43  ;;  %v332_v17 = vcvt.s32.f32 %v330_v62  ;;  %v390_v62 = vand.u32 65535, %v2452_v47 }
 0x26e   :  { %v2578_v41 = vcvt.s32.f32 %v541_v12 }
 0x26f   :  { %v1446_v38 = vpack.c.bf16 %v1435_v22, %v1434_v10 }
 0x270   :  { %544 = vmin.xlane.f32.xlu0 %v2578_v41 }
 0x271   :  { %1925 = vmatprep.mubr.msk.bf16.mxu1 %vm1498_vm1, %v1446_v38 }
 0x272   :  { %1926 = vmatmul.mubr.msk.bf16.vlgmr.msra.gmra.mxu1 %vm1498_vm1, %v1447_v55 }
 0x278   :  { %v2001_v31 = vpop.eup %2000 }
 0x279   :  { %v2003_v43 = vpop.eup %2002  ;;  %v1310_v49 = vadd.f32 1.0, %v2001_v31 }
 0x27a   :  { %v1311_v29 = vadd.f32 1.0, %v2003_v43 }
 0x27b   :  { %2004 = vrcp.f32 %v1310_v49 }
 0x27c   :  { %2006 = vrcp.f32 %v1311_v29 }
 0x286   :  { %1390 = vrot.lane.b32.xlu0 %v2339_v8, %s2155_s21 }
 0x288   :  { %v2005_v10 = vpop.eup %2004 }
 0x289   :  { %v2007_v35 = vpop.eup %2006  ;;  %v1358_v43 = vmul.f32 %v2005_v10, %v2418_v20  ;;  %v362_v20 = vcvt.s32.f32 %v360_v11 }
 0x28a   :  { %v1359_v49 = vmul.f32 %v2007_v35, %v2466_v61  ;;  %v420_v35 = vand.u32 65535, %v2473_v3 }
 0x28b   :  { %v1919_v6 = vpop.f32.mrf.mxu0  ;;  %v1438_v44 = vmul.f32 %v1403_v32, %v1358_v43 }
 0x28c   :  { %1673 = vst [vmem:[#allocation8 + $0x10] sm:$0xff] %v1919_v6  ;;  %v422_v47 = vcvt.s32.f32 %v420_v35 }
 0x28d   :  { %v1557_v27 = vpop.f32.mrf.mxu0 }
 0x28e   :  { %1671 = vst [vmem:[#allocation8] sm:$0xff] %v1557_v27 }
 0x28f   :  { %v1920_v21 = vpop.f32.mrf.mxu0 }
 0x290   :  { %1674 = vst [vmem:[#allocation8 + $0x18] sm:$0xff] %v1920_v21 }
 0x291   :  { %v1560_v16 = vpop.f32.mrf.mxu0 }
 0x292   :  { %1672 = vst [vmem:[#allocation8 + $0x8] sm:$0xff] %v1560_v16 }
 0x29d   :  { %v290_v46 = vpop.xlane.xlu1 %289  ;;  %v2587_v42 = vpop.xlane.xlu0 %334 }
 0x29e   :  { %vm310_vm2 = vcmp.eq.f32.partialorder %v2388_v58, %v290_v46  ;;  %vm336_vm3 = vcmp.eq.f32.partialorder %v2446_v45, %v2587_v42 }
 0x29f   :  { %v326_v12 = vsel %vm310_vm2, %v2431_v36, 4  ;;  %v337_v21 = vsel %vm336_vm3, %v332_v17, inf }
 0x2a0   :  { %v2593_v22 = vsel %vm248_vm0, %v326_v12, 2147483647 }
 0x2a1   :  { %v296_v38 = vpop.xlane.xlu1 %295  ;;  %v2595_v55 = vpop.xlane.xlu0 %364  ;;  %v526_v37 = vshra.s32 %v2593_v22, 16 }
 0x2a2   :  { %vm312_vm4 = vcmp.eq.f32.partialorder %v2398_v63, %v296_v38  ;;  %vm366_vm5 = vcmp.eq.f32.partialorder %v2455_v52, %v2595_v55  ;;  %v392_v52 = vcvt.s32.f32 %v390_v62 }
 0x2a3   :  { %v328_v6 = vsel %vm312_vm4, %v2431_v36, 4  ;;  %v2603_v31 = vcvt.s32.f32 %v526_v37  ;;  %v367_v10 = vsel %vm366_vm5, %v362_v20, inf  ;;  %v450_v20 = vand.u32 65535, %v2535_v28 }
 0x2a4   :  { %v2607_v27 = vsel %vm248_vm0, %v328_v6, 2147483647  ;;  %v375_v6 = vand.u32 65535, %v2496_v19  ;;  %v435_v19 = vand.u32 65535, %v2514_v25 }
 0x2a5   :  { %529 = vmin.xlane.f32.xlu1 %v2603_v31  ;;  %v1405_v45 = vpop.permute.xlu1 %1404  ;;  %338 = vmin.xlane.f32.xlu0 %v337_v21  ;;  %v556_v29 = vshra.s32 %v2607_v27, 16  ;;  %v2614_v46 = vpop.xlane.xlu0 %394  ;;  %v405_v21 = vand.u32 65535, %v2505_v33  ;;  %v465_v33 = vand.u32 65535, %v2522_v53 }
 0x2a6   :  { %v1439_v16 = vmul.f32 %v1405_v45, %v1359_v49  ;;  %vm396_vm6 = vcmp.eq.f32.partialorder %v2461_v54, %v2614_v46  ;;  %v345_v54 = vand.u32 65535, %v2489_v24  ;;  %v377_v49 = vcvt.s32.f32 %v375_v6 }
 0x2a7   :  { %v2617_v12 = vcvt.s32.f32 %v556_v29  ;;  %v397_v32 = vsel %vm396_vm6, %v392_v52, inf  ;;  %v495_v52 = vand.u32 65535, %v2554_v13  ;;  %v1740_v6 = vmul.f32 -1.442695, %v2343_v14 }
 0x2a8   :  { %v1448_v61 = vpack.c.bf16 %v1439_v16, %v1438_v44  ;;  %v347_v3 = vcvt.s32.f32 %v345_v54 }
 0x2a9   :  { %559 = vmin.xlane.f32.xlu1 %v2617_v12  ;;  %368 = vmin.xlane.f32.xlu0 %v367_v10  ;;  %v480_v10 = vand.u32 65535, %v2543_v15 }
 0x2aa   :  { %1929 = vmatprep.mubr.msk.bf16.mxu1 %vm1498_vm1, %v1448_v61  ;;  %v452_v61 = vcvt.s32.f32 %v450_v20 }
 0x2ab   :  { %v482_v28 = vcvt.s32.f32 %v480_v10 }
 0x2ad   :  { %398 = vmin.xlane.f32.xlu0 %v397_v32 }
 0x2b8   :  { %v2624_v38 = vpop.xlane.xlu0 %424 }
 0x2b9   :  { %vm426_vm7 = vcmp.eq.f32.partialorder %v2476_v7, %v2624_v38 }
 0x2ba   :  { %1392 = vrot.lane.b32.xlu1 %v2343_v14, %s2155_s21  ;;  %v427_v37 = vsel %vm426_vm7, %v422_v47, inf  ;;  %v497_v47 = vcvt.s32.f32 %v495_v52 }
 0x2bb   :  { %428 = vmin.xlane.f32.xlu0 %v427_v37  ;;  %v540_v37 = vand.u32 65535, %v2571_v56  ;;  %v1739_v56 = vmul.f32 -1.442695, %v2339_v8 }
 0x2bd   :  { %v542_v54 = vcvt.s32.f32 %v540_v37  ;;  %2008 = vpow2.f32 %v1739_v56 }
 0x2be   :  { %2010 = vpow2.f32 %v1740_v6 }
 0x2d6   :  { %v2630_v17 = vpop.xlane.xlu1 %349 }
 0x2d7   :  { %vm351_vm8 = vcmp.eq.f32.partialorder %v2501_v30, %v2630_v17  ;;  %v407_v30 = vcvt.s32.f32 %v405_v21 }
 0x2d8   :  { %v352_v43 = vsel %vm351_vm8, %v347_v3, inf }
 0x2da   :  { %v2633_v11 = vpop.xlane.xlu1 %379 }
 0x2db   :  { %vm381_vm9 = vcmp.eq.f32.partialorder %v2510_v34, %v2633_v11  ;;  %v437_v34 = vcvt.s32.f32 %v435_v19  ;;  %v386_v6 = vcvt.f32.s32 %v2633_v11 }
 0x2dc   :  { %v382_v45 = vsel %vm381_vm9, %v377_v49, inf }
 0x2de   :  { %353 = vmin.xlane.f32.xlu1 %v352_v43  ;;  %v2638_v7 = vpop.xlane.xlu1 %409 }
 0x2df   :  { %vm411_vm10 = vcmp.eq.f32.partialorder %v2518_v39, %v2638_v7  ;;  %v467_v39 = vcvt.s32.f32 %v465_v33 }
 0x2e0   :  { %v412_v29 = vsel %vm411_vm10, %v407_v30, inf }
 0x2e2   :  { %383 = vmin.xlane.f32.xlu1 %v382_v45  ;;  %v2643_v24 = vpop.xlane.xlu1 %439  ;;  %v341_v45 = vcvt.f32.s32 %v2587_v42 }
 0x2e3   :  { %vm441_vm11 = vcmp.eq.f32.partialorder %v2525_v9, %v2643_v24 }
 0x2e4   :  { %v442_v16 = vsel %vm441_vm11, %v437_v34, inf  ;;  %v555_v34 = vand.u32 65535, %v2607_v27  ;;  %v342_v33 = vshll.u32 %v341_v45, 16 }
 0x2e6   :  { %413 = vmin.xlane.f32.xlu1 %v412_v29  ;;  %v2650_v44 = vpop.xlane.xlu1 %469  ;;  %v557_v42 = vcvt.s32.f32 %v555_v34 }
 0x2e7   :  { %vm471_vm12 = vcmp.eq.f32.partialorder %v2529_v23, %v2650_v44  ;;  %v510_v23 = vand.u32 65535, %v2557_v26 }
 0x2e8   :  { %v472_v25 = vsel %vm471_vm12, %v467_v39, inf }
 0x2ea   :  { %443 = vmin.xlane.f32.xlu1 %v442_v16 }
 0x2ed   :  { %v2656_v62 = vpop.xlane.xlu0 %454 }
 0x2ee   :  { %473 = vmin.xlane.f32.xlu1 %v472_v25  ;;  %vm456_vm13 = vcmp.eq.f32.partialorder %v2540_v40, %v2656_v62  ;;  %v512_v40 = vcvt.s32.f32 %v510_v23 }
 0x2ef   :  { %v457_v9 = vsel %vm456_vm13, %v452_v61, inf }
 0x2f0   :  { %458 = vmin.xlane.f32.xlu0 %v457_v9 }
 0x2f1   :  { %v2661_v53 = vpop.xlane.xlu0 %484 }
 0x2f2   :  { %vm486_vm14 = vcmp.eq.f32.partialorder %v2551_v5, %v2661_v53 }
 0x2f3   :  { %v487_v32 = vsel %vm486_vm14, %v482_v28, inf }
 0x2f4   :  { %488 = vmin.xlane.f32.xlu0 %v487_v32 }
 0x2f5   :  { %v2667_v35 = vpop.xlane.xlu1 %499  ;;  %v2669_v15 = vpop.xlane.xlu0 %514 }
 0x2f6   :  { %vm501_vm15 = vcmp.eq.f32.partialorder %v2565_v59, %v2667_v35  ;;  %vm516_vm2 = vcmp.eq.f32.partialorder %v2567_v2, %v2669_v15  ;;  %v2009_v59 = vpop.eup %2008 }
 0x2f7   :  { %v502_v13 = vsel %vm501_vm15, %v497_v47, inf  ;;  %v517_v26 = vsel %vm516_vm2, %v512_v40, inf  ;;  %v2011_v2 = vpop.eup %2010  ;;  %v1304_v43 = vadd.f32 1.0, %v2009_v59 }
 0x2f8   :  { %503 = vmin.xlane.f32.xlu1 %v502_v13  ;;  %518 = vmin.xlane.f32.xlu0 %v517_v26  ;;  %v1305_v49 = vadd.f32 1.0, %v2011_v2  ;;  %v371_v26 = vcvt.f32.s32 %v2595_v55 }
 0x2f9   :  { %v2676_v5 = vpop.xlane.xlu0 %544  ;;  %2012 = vrcp.f32 %v1304_v43 }
 0x2fa   :  { %vm546_vm3 = vcmp.eq.f32.partialorder %v2578_v41, %v2676_v5  ;;  %2014 = vrcp.f32 %v1305_v49  ;;  %v525_v41 = vand.u32 65535, %v2593_v22  ;;  %v372_v2 = vshll.u32 %v371_v26, 16 }
 0x2fb   :  { %v547_v3 = vsel %vm546_vm3, %v542_v54, inf  ;;  %v401_v49 = vcvt.f32.s32 %v2614_v46 }
 0x2fc   :  { %548 = vmin.xlane.f32.xlu0 %v547_v3  ;;  %v527_v29 = vcvt.s32.f32 %v525_v41  ;;  %v416_v41 = vcvt.f32.s32 %v2638_v7 }
 0x2fd   :  { %v1391_v21 = vpop.permute.xlu0 %1390  ;;  %v402_v46 = vshll.u32 %v401_v49, 16 }
 0x306   :  { %v2013_v39 = vpop.eup %2012 }
 0x307   :  { %v2015_v61 = vpop.eup %2014  ;;  %v1352_v28 = vmul.f32 %v2013_v39, %v2339_v8  ;;  %v446_v39 = vcvt.f32.s32 %v2643_v24 }
 0x308   :  { %v1353_v52 = vmul.f32 %v2015_v61, %v2343_v14  ;;  %v356_v14 = vcvt.f32.s32 %v2630_v17  ;;  %v387_v17 = vshll.u32 %v386_v6, 16  ;;  %v491_v6 = vcvt.f32.s32 %v2661_v53 }
 0x309   :  { %v1432_v47 = vmul.f32 %v1391_v21, %v1352_v28 }
 0x30a   :  { %v357_v56 = vshll.u32 %v356_v14, 16 }
 0x312   :  { %1406 = vrot.lane.b32.xlu0 %v2414_v18, %s2155_s21 }
 0x32e   :  { %v2686_v30 = vpop.xlane.xlu1 %529  ;;  %v339_v19 = vpop.xlane.xlu0 %338 }
 0x32f   :  { %v340_v16 = vcvt.f32.s32 %v339_v19  ;;  %vm531_vm4 = vcmp.eq.f32.partialorder %v2603_v31, %v2686_v30 }
 0x330   :  { %v532_v20 = vsel %vm531_vm4, %v527_v29, inf }
 0x331   :  { %v2691_v25 = vadd.s32 %v342_v33, %v340_v16  ;;  %533 = vmin.xlane.f32.xlu1 %v532_v20  ;;  %v431_v33 = vcvt.f32.s32 %v2624_v38  ;;  %v417_v20 = vshll.u32 %v416_v41, 16 }
 0x332   :  { %v1927_v22 = vpop.f32.mrf.mxu1  ;;  %v2693_v10 = vpop.xlane.xlu1 %559 }
 0x333   :  { %1681 = vst [vmem:[#allocation8 + $0x50] sm:$0xff] %v1927_v22  ;;  %vm561_vm5 = vcmp.eq.f32.partialorder %v2617_v12, %v2693_v10  ;;  %vm569_vm6 = vcmp.eq.s32.totalorder %v2431_v36, %v2691_v25  ;;  %v369_v8 = vpop.xlane.xlu0 %368 }
 0x334   :  { %v1589_v27 = vpop.f32.mrf.mxu1  ;;  %v562_v9 = vsel %vm561_vm5, %v557_v42, inf  ;;  %v2703_v31 = vsel %vm569_vm6, -inf, %v2301_v50  ;;  %v370_v54 = vcvt.f32.s32 %v369_v8 }
 0x335   :  { %1679 = vst [vmem:[#allocation8 + $0x40] sm:$0xff] %v1589_v27  ;;  %563 = vmin.xlane.f32.xlu1 %v562_v9  ;;  %v601_v12 = vsel %vm248_vm0, %v2703_v31, -inf  ;;  %v432_v9 = vshll.u32 %v431_v33, 16  ;;  %v521_v33 = vcvt.f32.s32 %v2669_v15 }
 0x336   :  { %v1928_v23 = vpop.f32.mrf.mxu1  ;;  %v1393_v32 = vpop.permute.xlu1 %1392  ;;  %602 = vmax.xlane.f32.xlu0 %v601_v12  ;;  %v2719_v45 = vadd.s32 %v372_v2, %v370_v54  ;;  %v476_v12 = vcvt.f32.s32 %v2650_v44  ;;  %v3344_v2 = vld [vmem:[#allocation12_spill] sm:$0xff] }
 0x337   :  { %1682 = vst [vmem:[#allocation8 + $0x58] sm:$0xff] %v1928_v23  ;;  %v1433_v40 = vmul.f32 %v1393_v32, %v1353_v52  ;;  %v399_v43 = vpop.xlane.xlu0 %398  ;;  %v447_v52 = vshll.u32 %v446_v39, 16 }
 0x338   :  { %v1592_v37 = vpop.f32.mrf.mxu1  ;;  %v400_v29 = vcvt.f32.s32 %v399_v43  ;;  %vm571_vm8 = vcmp.eq.s32.totalorder %v2431_v36, %v2719_v45  ;;  %v477_v54 = vshll.u32 %v476_v12, 16  ;;  %v551_v12 = vcvt.f32.s32 %v2676_v5 }
 0x339   :  { %v1445_v13 = vpack.c.bf16 %v1433_v40, %v1432_v47  ;;  %1680 = vst [vmem:[#allocation8 + $0x48] sm:$0xff] %v1592_v37  ;;  %v2756_v32 = vsel %vm571_vm8, -inf, %v2316_v57  ;;  %v461_v37 = vcvt.f32.s32 %v2656_v62 }
 0x33a   :  { %v2737_v22 = vadd.s32 %v402_v46, %v400_v29  ;;  %v607_v14 = vsel %vm248_vm0, %v2756_v32, -inf  ;;  %v3345_v29 = vld [vmem:[#allocation13_spill] sm:$0xff]  ;;  %v506_v46 = vcvt.f32.s32 %v2667_v35  ;;  %v3348_v35 = vld [vmem:[#allocation15_spill] sm:$0xff] }
 0x33b   :  { %1922 = vmatmul.mubr.msk.bf16.gmra.mxu0 %vm1498_vm1, %v1445_v13 }
 0x33c   :  { %vm573_vm11 = vcmp.eq.s32.totalorder %v2431_v36, %v2737_v22 }
 0x33d   :  { %v2781_v62 = vsel %vm573_vm11, -inf, %v2328_v1 }
 0x344   :  { %v429_v34 = vpop.xlane.xlu0 %428 }
 0x345   :  { %v430_v42 = vcvt.f32.s32 %v429_v34  ;;  %v492_v34 = vshll.u32 %v491_v6, 16 }
 0x346   :  { %1408 = vrot.lane.b32.xlu1 %v2464_v60, %s2155_s21 }
 0x347   :  { %v2758_v47 = vadd.s32 %v432_v9, %v430_v42 }
 0x349   :  { %3343 = vst [vmem:[#allocation21_spill] sm:$0xff] %v2758_v47  ;;  %vm575_vm13 = vcmp.eq.s32.totalorder %v2431_v36, %v2758_v47 }
 0x34a   :  { %v2804_v53 = vsel %vm575_vm13, -inf, %v3345_v29 }
 0x367   :  { %v354_v3 = vpop.xlane.xlu1 %353 }
 0x368   :  { %v355_v59 = vcvt.f32.s32 %v354_v3 }
 0x36a   :  { %v2716_v21 = vadd.s32 %v357_v56, %v355_v59  ;;  %v462_v56 = vshll.u32 %v461_v37, 16 }
 0x36b   :  { %v384_v19 = vpop.xlane.xlu1 %383 }
 0x36c   :  { %v385_v55 = vcvt.f32.s32 %v384_v19  ;;  %vm570_vm7 = vcmp.eq.s32.totalorder %v2431_v36, %v2716_v21 }
 0x36d   :  { %v2727_v11 = vsel %vm570_vm7, -inf, %v2297_v48 }
 0x36e   :  { %v2730_v7 = vadd.s32 %v387_v17, %v385_v55  ;;  %v604_v16 = vsel %vm248_vm0, %v2727_v11, -inf  ;;  %v613_v17 = vsel %vm248_vm0, %v2781_v62, -inf }
 0x36f   :  { %605 = vmax.xlane.f32.xlu1 %v604_v16  ;;  %v414_v61 = vpop.xlane.xlu1 %413 }
 0x370   :  { %v415_v27 = vcvt.f32.s32 %v414_v61  ;;  %vm572_vm9 = vcmp.eq.s32.totalorder %v2431_v36, %v2730_v7 }
 0x371   :  { %v2745_v38 = vsel %vm572_vm9, -inf, %v2303_v51 }
 0x372   :  { %v2747_v24 = vadd.s32 %v417_v20, %v415_v27  ;;  %v610_v28 = vsel %vm248_vm0, %v2745_v38, -inf  ;;  %v3347_v20 = vld [vmem:[#allocation14_spill] sm:$0xff]  ;;  %v619_v27 = vsel %vm248_vm0, %v2804_v53, -inf }
 0x373   :  { %v444_v23 = vpop.xlane.xlu1 %443  ;;  %611 = vmax.xlane.f32.xlu0 %v610_v28  ;;  %v507_v28 = vshll.u32 %v506_v46, 16 }
 0x374   :  { %v445_v40 = vcvt.f32.s32 %v444_v23  ;;  %vm574_vm10 = vcmp.eq.s32.totalorder %v2431_v36, %v2747_v24 }
 0x375   :  { %v2769_v44 = vsel %vm574_vm10, -inf, %v2326_v0 }
 0x376   :  { %v2771_v13 = vadd.s32 %v447_v52, %v445_v40  ;;  %v616_v8 = vsel %vm248_vm0, %v2769_v44, -inf  ;;  %v522_v52 = vshll.u32 %v521_v33, 16 }
 0x377   :  { %617 = vmax.xlane.f32.xlu1 %v616_v8  ;;  %v474_v26 = vpop.xlane.xlu1 %473  ;;  %608 = vmax.xlane.f32.xlu0 %v607_v14 }
 0x378   :  { %v475_v3 = vcvt.f32.s32 %v474_v26  ;;  %vm576_vm12 = vcmp.eq.s32.totalorder %v2431_v36, %v2771_v13  ;;  %v3350_v26 = vld [vmem:[#allocation17_spill] sm:$0xff] }
 0x379   :  { %v459_v59 = vpop.xlane.xlu0 %458  ;;  %v2792_v43 = vsel %vm576_vm12, -inf, %v3344_v2 }
 0x37a   :  { %v2794_v49 = vadd.s32 %v477_v54, %v475_v3  ;;  %v460_v41 = vcvt.f32.s32 %v459_v59  ;;  %v622_v19 = vsel %vm248_vm0, %v2792_v43, -inf }
 0x37b   :  { %623 = vmax.xlane.f32.xlu1 %v622_v19  ;;  %614 = vmax.xlane.f32.xlu0 %v613_v17  ;;  %v3353_v19 = vld [vmem:[#allocation16_spill] sm:$0xff] }
 0x37c   :  { %v2806_v55 = vadd.s32 %v462_v56, %v460_v41  ;;  %vm578_vm14 = vcmp.eq.s32.totalorder %v2431_v36, %v2794_v49  ;;  %v552_v56 = vshll.u32 %v551_v12, 16 }
 0x37d   :  { %v489_v16 = vpop.xlane.xlu0 %488  ;;  %v2816_v39 = vsel %vm578_vm14, -inf, %v3347_v20 }
 0x37e   :  { %3346 = vst [vmem:[#allocation12_spill] sm:$0xff] %v2806_v55  ;;  %v490_v61 = vcvt.f32.s32 %v489_v16  ;;  %v628_v42 = vsel %vm248_vm0, %v2816_v39, -inf  ;;  %vm577_vm15 = vcmp.eq.s32.totalorder %v2431_v36, %v2806_v55 }
 0x37f   :  { %629 = vmax.xlane.f32.xlu1 %v628_v42  ;;  %620 = vmax.xlane.f32.xlu0 %v619_v27  ;;  %v2828_v15 = vsel %vm577_vm15, -inf, %v3348_v35 }
 0x380   :  { %v2830_v9 = vadd.s32 %v492_v34, %v490_v61  ;;  %v625_v14 = vsel %vm248_vm0, %v2828_v15, -inf  ;;  %v3354_v34 = vld [vmem:[#allocation19_spill] sm:$0xff] }
 0x381   :  { %v504_v23 = vpop.xlane.xlu1 %503  ;;  %v519_v40 = vpop.xlane.xlu0 %518 }
 0x382   :  { %3349 = vst [vmem:[#allocation13_spill] sm:$0xff] %v2830_v9  ;;  %v505_v37 = vcvt.f32.s32 %v504_v23  ;;  %v520_v8 = vcvt.f32.s32 %v519_v40  ;;  %vm579_vm2 = vcmp.eq.s32.totalorder %v2431_v36, %v2830_v9 }
 0x383   :  { %626 = vmax.xlane.f32.xlu0 %v625_v14  ;;  %v2841_v54 = vsel %vm579_vm2, -inf, %v3350_v26 }
 0x384   :  { %v2843_v3 = vadd.s32 %v507_v28, %v505_v37  ;;  %v2845_v5 = vadd.s32 %v522_v52, %v520_v8  ;;  %v631_v41 = vsel %vm248_vm0, %v2841_v54, -inf  ;;  %v1747_v28 = vmul.f32 -1.442695, %v2414_v18 }
 0x385   :  { %v549_v6 = vpop.xlane.xlu0 %548  ;;  %v1748_v52 = vmul.f32 -1.442695, %v2464_v60  ;;  %v536_v8 = vcvt.f32.s32 %v2686_v30 }
 0x386   :  { %3351 = vst [vmem:[#allocation14_spill] sm:$0xff] %v2843_v3  ;;  %3352 = vst [vmem:[#allocation15_spill] sm:$0xff] %v2845_v5  ;;  %v550_v59 = vcvt.f32.s32 %v549_v6  ;;  %vm3333_vm3 = vcmp.eq.s32.totalorder %v2431_v36, %v2843_v3  ;;  %vm3322_vm4 = vcmp.eq.s32.totalorder %v2431_v36, %v2845_v5  ;;  %2016 = vpow2.f32 %v1747_v28 }
 0x387   :  { %632 = vmax.xlane.f32.xlu0 %v631_v41  ;;  %v2857_v17 = vsel %vm3333_vm3, -inf, %v3353_v19  ;;  %v2863_v46 = vsel %vm3322_vm4, -inf, %v3354_v34  ;;  %2018 = vpow2.f32 %v1748_v52  ;;  %v566_v6 = vcvt.f32.s32 %v2693_v10 }
 0x388   :  { %v2865_v33 = vadd.s32 %v552_v56, %v550_v59  ;;  %v634_v16 = vsel %vm248_vm0, %v2857_v17, -inf  ;;  %v637_v61 = vsel %vm248_vm0, %v2863_v46, -inf  ;;  %v537_v56 = vshll.u32 %v536_v8, 16 }
 0x389   :  { %635 = vmax.xlane.f32.xlu1 %v634_v16  ;;  %v1407_v59 = vpop.permute.xlu0 %1406  ;;  %v567_v52 = vshll.u32 %v566_v6, 16 }
 0x38a   :  { %3355 = vst [vmem:[#allocation17_spill] sm:$0xff] %v2865_v33  ;;  %vm3321_vm5 = vcmp.eq.s32.totalorder %v2431_v36, %v2865_v33 }
 0x38b   :  { %638 = vmax.xlane.f32.xlu0 %v637_v61  ;;  %v2877_v42 = vsel %vm3321_vm5, -inf, %v2404_v4 }
 0x38c   :  { %v643_v27 = vsel %vm248_vm0, %v2877_v42, -inf }
 0x38f   :  { %644 = vmax.xlane.f32.xlu0 %v643_v27 }
 0x393   :  { %v2017_v12 = vpop.eup %2016 }
 0x394   :  { %v2019_v23 = vpop.eup %2018  ;;  %v1312_v40 = vadd.f32 1.0, %v2017_v12 }
 0x395   :  { %v1313_v37 = vadd.f32 1.0, %v2019_v23 }
 0x396   :  { %2020 = vrcp.f32 %v1312_v40 }
 0x397   :  { %2022 = vrcp.f32 %v1313_v37 }
 0x3a3   :  { %v2021_v16 = vpop.eup %2020 }
 0x3a4   :  { %v2023_v27 = vpop.eup %2022  ;;  %v1360_v12 = vmul.f32 %v2021_v16, %v2414_v18 }
 0x3a5   :  { %v1361_v37 = vmul.f32 %v2023_v27, %v2464_v60 }
 0x3ba   :  { %v534_v14 = vpop.xlane.xlu1 %533 }
 0x3bb   :  { %v535_v41 = vcvt.f32.s32 %v534_v14 }
 0x3bd   :  { %v2885_v61 = vadd.s32 %v537_v56, %v535_v41 }
 0x3be   :  { %v564_v28 = vpop.xlane.xlu1 %563 }
 0x3bf   :  { %3356 = vst [vmem:[#allocation16_spill] sm:$0xff] %v2885_v61  ;;  %v565_v33 = vcvt.f32.s32 %v564_v28  ;;  %v603_v5 = vpop.xlane.xlu0 %602  ;;  %vm3323_vm5 = vcmp.eq.s32.totalorder %v2431_v36, %v2885_v61 }
 0x3c0   :  { %vm649_vm4 = vcmp.eq.f32.partialorder %v2703_v31, %v603_v5  ;;  %v2895_v30 = vsel %vm3323_vm5, -inf, %v2388_v58  ;;  %v1440_v31 = vmul.f32 %v1407_v59, %v1360_v12 }
 0x3c1   :  { %v2897_v10 = vadd.s32 %v567_v52, %v565_v33  ;;  %v665_v23 = vsel %vm649_vm4, %v2431_v36, 4  ;;  %v640_v40 = vsel %vm248_vm0, %v2895_v30, -inf }
 0x3c2   :  { %v2904_v8 = vsel %vm248_vm0, %v665_v23, 2147483647  ;;  %641 = vmax.xlane.f32.xlu1 %v640_v40  ;;  %v1409_v18 = vpop.permute.xlu1 %1408 }
 0x3c3   :  { %3357 = vst [vmem:[#allocation19_spill] sm:$0xff] %v2897_v10  ;;  %v1441_v5 = vmul.f32 %v1409_v18, %v1361_v37  ;;  %vm3324_vm5 = vcmp.eq.s32.totalorder %v2431_v36, %v2897_v10  ;;  %v683_v33 = vshra.s32 %v2904_v8, 16 }
 0x3c4   :  { %v2913_v14 = vsel %vm3324_vm5, -inf, %v2398_v63 }
 0x3c5   :  { %v1449_v56 = vpack.c.bf16 %v1441_v5, %v1440_v31  ;;  %v646_v60 = vsel %vm248_vm0, %v2913_v14, -inf  ;;  %v2917_v6 = vcvt.s32.f32 %v683_v33 }
 0x3c6   :  { %647 = vmax.xlane.f32.xlu1 %v646_v60 }
 0x3c7   :  { %1930 = vmatmul.mubr.msk.bf16.gmra.mxu1 %vm1498_vm1, %v1449_v56  ;;  %686 = vmin.xlane.f32.xlu0 %v2917_v6 }
 0x3f8   :  { %v606_v59 = vpop.xlane.xlu1 %605 }
 0x3f9   :  { %vm650_vm4 = vcmp.eq.f32.partialorder %v2727_v11, %v606_v59 }
 0x3fa   :  { %v666_v41 = vsel %vm650_vm4, %v2431_v36, 4 }
 0x3fb   :  { %v2924_v16 = vsel %vm248_vm0, %v666_v41, 2147483647  ;;  %v1923_v27 = vpop.f32.mrf.mxu0 }
 0x3fc   :  { %1677 = vst [vmem:[#allocation8 + $0x30] sm:$0xff] %v1923_v27  ;;  %v612_v28 = vpop.xlane.xlu0 %611  ;;  %v698_v52 = vshra.s32 %v2924_v16, 16 }
 0x3fd   :  { %vm652_vm5 = vcmp.eq.f32.partialorder %v2745_v38, %v612_v28  ;;  %v1573_v12 = vpop.f32.mrf.mxu0 }
 0x3fe   :  { %v668_v23 = vsel %vm652_vm5, %v2431_v36, 4  ;;  %1675 = vst [vmem:[#allocation8 + $0x20] sm:$0xff] %v1573_v12  ;;  %v2929_v40 = vcvt.s32.f32 %v698_v52 }
 0x3ff   :  { %v2932_v11 = vsel %vm248_vm0, %v668_v23, 2147483647  ;;  %v1924_v37 = vpop.f32.mrf.mxu0 }
 0x400   :  { %1678 = vst [vmem:[#allocation8 + $0x38] sm:$0xff] %v1924_v37  ;;  %701 = vmin.xlane.f32.xlu1 %v2929_v40  ;;  %v618_v18 = vpop.xlane.xlu1 %617  ;;  %v609_v31 = vpop.xlane.xlu0 %608  ;;  %v728_v5 = vshra.s32 %v2932_v11, 16 }
 0x401   :  { %vm654_vm1 = vcmp.eq.f32.partialorder %v2769_v44, %v618_v18  ;;  %vm651_vm4 = vcmp.eq.f32.partialorder %v2756_v32, %v609_v31  ;;  %v1576_v38 = vpop.f32.mrf.mxu0 }
 0x402   :  { %v670_v33 = vsel %vm654_vm1, %v2431_v36, 4  ;;  %v667_v56 = vsel %vm651_vm4, %v2431_v36, 4  ;;  %1676 = vst [vmem:[#allocation8 + $0x28] sm:$0xff] %v1576_v38  ;;  %v2940_v60 = vcvt.s32.f32 %v728_v5 }
 0x403   :  { %v2943_v59 = vsel %vm248_vm0, %v670_v33, 2147483647  ;;  %v2946_v41 = vsel %vm248_vm0, %v667_v56, 2147483647 }
 0x404   :  { %v624_v27 = vpop.xlane.xlu1 %623  ;;  %731 = vmin.xlane.f32.xlu1 %v2940_v60  ;;  %v615_v44 = vpop.xlane.xlu0 %614  ;;  %v758_v32 = vshra.s32 %v2943_v59, 16  ;;  %v713_v28 = vshra.s32 %v2946_v41, 16 }
 0x405   :  { %vm656_vm5 = vcmp.eq.f32.partialorder %v2792_v43, %v624_v27  ;;  %vm653_vm1 = vcmp.eq.f32.partialorder %v2781_v62, %v615_v44 }
 0x406   :  { %v672_v52 = vsel %vm656_vm5, %v2431_v36, 4  ;;  %v669_v12 = vsel %vm653_vm1, %v2431_v36, 4  ;;  %v2955_v23 = vcvt.s32.f32 %v758_v32  ;;  %v2957_v37 = vcvt.s32.f32 %v713_v28 }
 0x407   :  { %v2960_v18 = vsel %vm248_vm0, %v672_v52, 2147483647  ;;  %v2963_v31 = vsel %vm248_vm0, %v669_v12, 2147483647 }
 0x408   :  { %v630_v5 = vpop.xlane.xlu1 %629  ;;  %761 = vmin.xlane.f32.xlu1 %v2955_v23  ;;  %716 = vmin.xlane.f32.xlu0 %v2957_v37  ;;  %v621_v62 = vpop.xlane.xlu0 %620  ;;  %v788_v43 = vshra.s32 %v2960_v18, 16  ;;  %v743_v38 = vshra.s32 %v2963_v31, 16 }
 0x409   :  { %vm658_vm4 = vcmp.eq.f32.partialorder %v2816_v39, %v630_v5  ;;  %vm655_vm5 = vcmp.eq.f32.partialorder %v2804_v53, %v621_v62 }
 0x40a   :  { %v674_v33 = vsel %vm658_vm4, %v2431_v36, 4  ;;  %v671_v56 = vsel %vm655_vm5, %v2431_v36, 4  ;;  %v2973_v27 = vcvt.s32.f32 %v788_v43  ;;  %v2975_v44 = vcvt.s32.f32 %v743_v38 }
 0x40b   :  { %v2978_v32 = vsel %vm248_vm0, %v674_v33, 2147483647  ;;  %v2981_v28 = vsel %vm248_vm0, %v671_v56, 2147483647 }
 0x40c   :  { %791 = vmin.xlane.f32.xlu1 %v2973_v27  ;;  %746 = vmin.xlane.f32.xlu0 %v2975_v44  ;;  %v627_v39 = vpop.xlane.xlu0 %626  ;;  %v818_v53 = vshra.s32 %v2978_v32, 16  ;;  %v773_v52 = vshra.s32 %v2981_v28, 16 }
 0x40d   :  { %vm657_vm1 = vcmp.eq.f32.partialorder %v2828_v15, %v627_v39 }
 0x40e   :  { %v673_v12 = vsel %vm657_vm1, %v2431_v36, 4  ;;  %v2989_v5 = vcvt.s32.f32 %v818_v53  ;;  %v2991_v62 = vcvt.s32.f32 %v773_v52 }
 0x40f   :  { %v2994_v43 = vsel %vm248_vm0, %v673_v12, 2147483647 }
 0x410   :  { %821 = vmin.xlane.f32.xlu1 %v2989_v5  ;;  %776 = vmin.xlane.f32.xlu0 %v2991_v62  ;;  %v633_v38 = vpop.xlane.xlu0 %632  ;;  %v803_v33 = vshra.s32 %v2994_v43, 16 }
 0x411   :  { %vm659_vm4 = vcmp.eq.f32.partialorder %v2841_v54, %v633_v38 }
 0x412   :  { %v675_v15 = vsel %vm659_vm4, %v2431_v36, 4  ;;  %v636_v56 = vpop.xlane.xlu1 %635  ;;  %v3001_v39 = vcvt.s32.f32 %v803_v33 }
 0x413   :  { %v3004_v53 = vsel %vm248_vm0, %v675_v15, 2147483647  ;;  %vm660_vm5 = vcmp.eq.f32.partialorder %v2857_v17, %v636_v56 }
 0x414   :  { %v676_v52 = vsel %vm660_vm5, %v2431_v36, 4  ;;  %806 = vmin.xlane.f32.xlu0 %v3001_v39  ;;  %v639_v12 = vpop.xlane.xlu0 %638  ;;  %v833_v10 = vshra.s32 %v3004_v53, 16 }
 0x415   :  { %v3011_v61 = vsel %vm248_vm0, %v676_v52, 2147483647  ;;  %vm661_vm1 = vcmp.eq.f32.partialorder %v2863_v46, %v639_v12 }
 0x416   :  { %v677_v54 = vsel %vm661_vm1, %v2431_v36, 4  ;;  %v3015_v38 = vcvt.s32.f32 %v833_v10  ;;  %v848_v33 = vshra.s32 %v3011_v61, 16 }
 0x417   :  { %v3019_v17 = vsel %vm248_vm0, %v677_v54, 2147483647 }
 0x418   :  { %836 = vmin.xlane.f32.xlu0 %v3015_v38  ;;  %v645_v15 = vpop.xlane.xlu0 %644  ;;  %v3022_v56 = vcvt.s32.f32 %v848_v33  ;;  %v863_v63 = vshra.s32 %v3019_v17, 16 }
 0x419   :  { %vm663_vm4 = vcmp.eq.f32.partialorder %v2877_v42, %v645_v15  ;;  %v682_v42 = vand.u32 65535, %v2904_v8 }
 0x41a   :  { %v679_v46 = vsel %vm663_vm4, %v2431_v36, 4  ;;  %851 = vmin.xlane.f32.xlu1 %v3022_v56  ;;  %v3028_v10 = vcvt.s32.f32 %v863_v63 }
 0x41b   :  { %v3031_v52 = vsel %vm248_vm0, %v679_v46, 2147483647 }
 0x41c   :  { %866 = vmin.xlane.f32.xlu0 %v3028_v10  ;;  %v893_v12 = vshra.s32 %v3031_v52, 16 }
 0x41e   :  { %v3035_v54 = vcvt.s32.f32 %v893_v12  ;;  %v684_v12 = vcvt.s32.f32 %v682_v42  ;;  %v697_v42 = vand.u32 65535, %v2924_v16  ;;  %v712_v16 = vand.u32 65535, %v2946_v41 }
 0x420   :  { %896 = vmin.xlane.f32.xlu0 %v3035_v54  ;;  %v714_v41 = vcvt.s32.f32 %v712_v16 }
 0x44b   :  { %v642_v33 = vpop.xlane.xlu1 %641 }
 0x44c   :  { %vm662_vm5 = vcmp.eq.f32.partialorder %v2895_v30, %v642_v33 }
 0x44d   :  { %v678_v15 = vsel %vm662_vm5, %v2431_v36, 4 }
 0x44e   :  { %v3042_v63 = vsel %vm248_vm0, %v678_v15, 2147483647  ;;  %v727_v15 = vand.u32 65535, %v2932_v11 }
 0x44f   :  { %v648_v46 = vpop.xlane.xlu1 %647  ;;  %v878_v58 = vshra.s32 %v3042_v63, 16 }
 0x450   :  { %vm664_vm1 = vcmp.eq.f32.partialorder %v2913_v14, %v648_v46  ;;  %v3046_v3 = vpop.xlane.xlu0 %686  ;;  %v699_v46 = vcvt.s32.f32 %v697_v42  ;;  %v729_v11 = vcvt.s32.f32 %v727_v15 }
 0x451   :  { %v680_v9 = vsel %vm664_vm1, %v2431_v36, 4  ;;  %v3049_v55 = vcvt.s32.f32 %v878_v58  ;;  %vm688_vm4 = vcmp.eq.f32.partialorder %v2917_v6, %v3046_v3 }
 0x452   :  { %v3054_v30 = vsel %vm248_vm0, %v680_v9, 2147483647  ;;  %v689_v8 = vsel %vm688_vm4, %v684_v12, inf }
 0x453   :  { %881 = vmin.xlane.f32.xlu1 %v3049_v55  ;;  %690 = vmin.xlane.f32.xlu0 %v689_v8  ;;  %v908_v33 = vshra.s32 %v3054_v30, 16 }
 0x455   :  { %v3058_v14 = vcvt.s32.f32 %v908_v33  ;;  %v757_v33 = vand.u32 65535, %v2943_v59 }
 0x457   :  { %911 = vmin.xlane.f32.xlu1 %v3058_v14  ;;  %v759_v59 = vcvt.s32.f32 %v757_v33 }
 0x487   :  { %v1931_v58 = vpop.f32.mrf.mxu1 }
 0x488   :  { %1685 = vst [vmem:[#allocation8 + $0x70] sm:$0xff] %v1931_v58 }
 0x489   :  { %v3063_v6 = vpop.xlane.xlu1 %701  ;;  %v1605_v9 = vpop.f32.mrf.mxu1 }
 0x48a   :  { %1683 = vst [vmem:[#allocation8 + $0x60] sm:$0xff] %v1605_v9  ;;  %vm703_vm5 = vcmp.eq.f32.partialorder %v2929_v40, %v3063_v6  ;;  %v787_v40 = vand.u32 65535, %v2960_v18  ;;  %v742_v9 = vand.u32 65535, %v2963_v31  ;;  %v817_v18 = vand.u32 65535, %v2978_v32 }
 0x48b   :  { %v1932_v12 = vpop.f32.mrf.mxu1  ;;  %v704_v8 = vsel %vm703_vm5, %v699_v46, inf  ;;  %v772_v31 = vand.u32 65535, %v2981_v28  ;;  %v802_v32 = vand.u32 65535, %v2994_v43 }
 0x48c   :  { %1686 = vst [vmem:[#allocation8 + $0x78] sm:$0xff] %v1932_v12  ;;  %705 = vmin.xlane.f32.xlu1 %v704_v8  ;;  %v789_v33 = vcvt.s32.f32 %v787_v40  ;;  %v744_v16 = vcvt.s32.f32 %v742_v9  ;;  %v832_v40 = vand.u32 65535, %v3004_v53 }
 0x48d   :  { %v1608_v47 = vpop.f32.mrf.mxu1  ;;  %v3069_v58 = vpop.xlane.xlu1 %731  ;;  %v804_v43 = vcvt.s32.f32 %v802_v32 }
 0x48e   :  { %1684 = vst [vmem:[#allocation8 + $0x68] sm:$0xff] %v1608_v47  ;;  %vm733_vm1 = vcmp.eq.f32.partialorder %v2940_v60, %v3069_v58 }
 0x48f   :  { %v734_v42 = vsel %vm733_vm1, %v729_v11, inf }
 0x490   :  { %735 = vmin.xlane.f32.xlu1 %v734_v42  ;;  %v819_v42 = vcvt.s32.f32 %v817_v18 }
 0x491   :  { %v3075_v46 = vpop.xlane.xlu1 %761  ;;  %v3077_v12 = vpop.xlane.xlu0 %716 }
 0x492   :  { %vm763_vm4 = vcmp.eq.f32.partialorder %v2955_v23, %v3075_v46  ;;  %vm718_vm5 = vcmp.eq.f32.partialorder %v2957_v37, %v3077_v12 }
 0x493   :  { %v764_v47 = vsel %vm763_vm4, %v759_v59, inf  ;;  %v719_v60 = vsel %vm718_vm5, %v714_v41, inf  ;;  %v774_v59 = vcvt.s32.f32 %v772_v31  ;;  %v847_v41 = vand.u32 65535, %v3011_v61 }
 0x494   :  { %765 = vmin.xlane.f32.xlu1 %v764_v47  ;;  %720 = vmin.xlane.f32.xlu0 %v719_v60  ;;  %v892_v61 = vand.u32 65535, %v3031_v52  ;;  %v1709_v52 = vmul.f32 -1.442695, %v2301_v50 }
 0x495   :  { %v3085_v15 = vpop.xlane.xlu1 %791  ;;  %v3087_v8 = vpop.xlane.xlu0 %746  ;;  %v849_v31 = vcvt.s32.f32 %v847_v41 }
 0x496   :  { %vm793_vm1 = vcmp.eq.f32.partialorder %v2973_v27, %v3085_v15  ;;  %vm748_vm3 = vcmp.eq.f32.partialorder %v2975_v44, %v3087_v8  ;;  %2024 = vpow2.f32 %v1709_v52 }
 0x497   :  { %v794_v23 = vsel %vm793_vm1, %v789_v33, inf  ;;  %v749_v37 = vsel %vm748_vm3, %v744_v16, inf }
 0x498   :  { %795 = vmin.xlane.f32.xlu1 %v794_v23  ;;  %750 = vmin.xlane.f32.xlu0 %v749_v37  ;;  %v894_v23 = vcvt.s32.f32 %v892_v61 }
 0x499   :  { %v3094_v11 = vpop.xlane.xlu1 %821  ;;  %v3096_v28 = vpop.xlane.xlu0 %776 }
 0x49a   :  { %vm823_vm4 = vcmp.eq.f32.partialorder %v2989_v5, %v3094_v11  ;;  %vm778_vm5 = vcmp.eq.f32.partialorder %v2991_v62, %v3096_v28  ;;  %v862_v5 = vand.u32 65535, %v3019_v17  ;;  %v834_v62 = vcvt.s32.f32 %v832_v40 }
 0x49b   :  { %v824_v27 = vsel %vm823_vm4, %v819_v42, inf  ;;  %v779_v44 = vsel %vm778_vm5, %v774_v59, inf  ;;  %v877_v42 = vand.u32 65535, %v3042_v63  ;;  %v907_v59 = vand.u32 65535, %v3054_v30 }
 0x49c   :  { %825 = vmin.xlane.f32.xlu1 %v824_v27  ;;  %780 = vmin.xlane.f32.xlu0 %v779_v44  ;;  %v864_v17 = vcvt.s32.f32 %v862_v5 }
 0x49d   :  { %v3103_v9 = vpop.xlane.xlu0 %806  ;;  %v879_v40 = vcvt.s32.f32 %v877_v42  ;;  %v909_v5 = vcvt.s32.f32 %v907_v59 }
 0x49e   :  { %vm808_vm3 = vcmp.eq.f32.partialorder %v3001_v39, %v3103_v9 }
 0x49f   :  { %v809_v47 = vsel %vm808_vm3, %v804_v43, inf }
 0x4a0   :  { %810 = vmin.xlane.f32.xlu0 %v809_v47 }
 0x4a1   :  { %v3109_v60 = vpop.xlane.xlu0 %836 }
 0x4a2   :  { %vm838_vm1 = vcmp.eq.f32.partialorder %v3015_v38, %v3109_v60 }
 0x4a3   :  { %v3113_v18 = vpop.xlane.xlu1 %851  ;;  %v839_v53 = vsel %vm838_vm1, %v834_v62, inf  ;;  %v2025_v37 = vpop.eup %2024 }
 0x4a4   :  { %vm853_vm4 = vcmp.eq.f32.partialorder %v3022_v56, %v3113_v18  ;;  %840 = vmin.xlane.f32.xlu0 %v839_v53  ;;  %v1001_v32 = vadd.f32 1.0, %v2025_v37 }
 0x4a5   :  { %v3118_v39 = vpop.xlane.xlu0 %866  ;;  %v854_v33 = vsel %vm853_vm4, %v849_v31, inf }
 0x4a6   :  { %vm868_vm5 = vcmp.eq.f32.partialorder %v3028_v10, %v3118_v39  ;;  %855 = vmin.xlane.f32.xlu1 %v854_v33  ;;  %2026 = vrcp.f32 %v1001_v32  ;;  %v693_v10 = vcvt.f32.s32 %v3046_v3 }
 0x4a7   :  { %v869_v16 = vsel %vm868_vm5, %v864_v17, inf }
 0x4a8   :  { %870 = vmin.xlane.f32.xlu0 %v869_v16  ;;  %v694_v43 = vshll.u32 %v693_v10, 16 }
 0x4a9   :  { %v3122_v38 = vpop.xlane.xlu0 %896 }
 0x4aa   :  { %vm898_vm3 = vcmp.eq.f32.partialorder %v3035_v54, %v3122_v38 }
 0x4ab   :  { %v899_v56 = vsel %vm898_vm3, %v894_v23, inf }
 0x4ac   :  { %900 = vmin.xlane.f32.xlu0 %v899_v56 }
 0x4b3   :  { %v2027_v3 = vpop.eup %2026 }
 0x4dc   :  { %v3130_v27 = vpop.xlane.xlu1 %881  ;;  %v691_v44 = vpop.xlane.xlu0 %690 }
 0x4dd   :  { %vm883_vm1 = vcmp.eq.f32.partialorder %v3049_v55, %v3130_v27  ;;  %v692_v54 = vcvt.f32.s32 %v691_v44  ;;  %v1710_v55 = vmul.f32 -1.442695, %v2297_v48 }
 0x4de   :  { %v884_v50 = vsel %vm883_vm1, %v879_v40, inf }
 0x4df   :  { %v695_v41 = vadd.s32 %v694_v43, %v692_v54  ;;  %885 = vmin.xlane.f32.xlu1 %v884_v50 }
 0x4e0   :  { %v3134_v47 = vpop.xlane.xlu1 %911 }
 0x4e1   :  { %vm921_vm4 = vcmp.eq.s32.totalorder %v2431_v36, %v695_v41  ;;  %vm913_vm5 = vcmp.eq.f32.partialorder %v3058_v14, %v3134_v47 }
 0x4e2   :  { %vm937_vm3 = vmor %vm569_vm6, %vm921_vm4  ;;  %v914_v63 = vsel %vm913_vm5, %v909_v5, inf }
 0x4e3   :  { %v1049_v30 = vsel %vm937_vm3, %v2027_v3, 0.0  ;;  %915 = vmin.xlane.f32.xlu1 %v914_v63 }
 0x4e4   :  { %1065 = vst.msk [vmem:[%s3303_s4] sm:$0xff] %vm248_vm0, %v1049_v30 }
 0x4e5   :  { %2139 = shalt.err (!%p2136_p0)
}
 0x4e6   :  { %s2159_s17 = smov 128   ;;  %s2160_s18 = smov 8   ;;  %2028 = vpow2.f32 %v1710_v55  ;;  %v1712_v25 = vmul.f32 -1.442695, %v2303_v51  ;;  %v1714_v14 = vmul.f32 -1.442695, %v2326_v0  ;;  %v738_v59 = vcvt.f32.s32 %v3069_v58 }
 0x4e7   :  { %1700 = dma.vmem_to_hbm [thread:$0]  %s1695_s15, 2048, %s3304_s5, [#allocation5], %s2159_s17, %s2159_s17, %s2160_s18   ;;  %v1711_v48 = vmul.f32 -1.442695, %v2316_v57  ;;  %v1716_v62 = vmul.f32 -1.442695, %v3344_v2  ;;  %v768_v50 = vcvt.f32.s32 %v3075_v46 }
 0x4e8   :  { %2030 = vpow2.f32 %v1712_v25  ;;  %v1713_v53 = vmul.f32 -1.442695, %v2328_v1  ;;  %v1718_v31 = vmul.f32 -1.442695, %v3347_v20  ;;  %v1715_v33 = vmul.f32 -1.442695, %v3345_v29 }
 0x4e9   :  { %2032 = vpow2.f32 %v1714_v14  ;;  %v1717_v51 = vmul.f32 -1.442695, %v3348_v35  ;;  %v1719_v57 = vmul.f32 -1.442695, %v3350_v26  ;;  %v1720_v1 = vmul.f32 -1.442695, %v3353_v19 }
 0x4ea   :  { %2034 = vpow2.f32 %v1711_v48  ;;  %v1721_v23 = vmul.f32 -1.442695, %v3354_v34  ;;  %v708_v35 = vcvt.f32.s32 %v3063_v6  ;;  %v1723_v26 = vmul.f32 -1.442695, %v2404_v4 }
 0x4eb   :  { %2036 = vpow2.f32 %v1716_v62  ;;  %v739_v5 = vshll.u32 %v738_v59, 16  ;;  %v723_v4 = vcvt.f32.s32 %v3077_v12  ;;  %v769_v46 = vshll.u32 %v768_v50, 16 }
 0x4ec   :  { %2038 = vpow2.f32 %v1713_v53  ;;  %v709_v19 = vshll.u32 %v708_v35, 16  ;;  %v798_v48 = vcvt.f32.s32 %v3085_v15  ;;  %v753_v12 = vcvt.f32.s32 %v3087_v8 }
 0x4ed   :  { %2040 = vpow2.f32 %v1718_v31  ;;  %v724_v31 = vshll.u32 %v723_v4, 16  ;;  %v813_v59 = vcvt.f32.s32 %v3103_v9 }
 0x4ee   :  { %2042 = vpow2.f32 %v1715_v33 }
 0x4ef   :  { %2044 = vpow2.f32 %v1717_v51 }
 0x4f3   :  { %v2029_v61 = vpop.eup %2028 }
 0x4f4   :  { %v1002_v17 = vadd.f32 1.0, %v2029_v61 }
 0x4f5   :  { %v2031_v0 = vpop.eup %2030 }
 0x4f6   :  { %2046 = vrcp.f32 %v1002_v17  ;;  %v1004_v2 = vadd.f32 1.0, %v2031_v0  ;;  %v2033_v16 = vpop.eup %2032 }
 0x4f7   :  { %2048 = vpow2.f32 %v1719_v57  ;;  %v2035_v20 = vpop.eup %2034  ;;  %v1006_v29 = vadd.f32 1.0, %v2033_v16  ;;  %v754_v16 = vshll.u32 %v753_v12, 16 }
 0x4f8   :  { %v2037_v56 = vpop.eup %2036  ;;  %2050 = vrcp.f32 %v1004_v2  ;;  %v1003_v52 = vadd.f32 1.0, %v2035_v20  ;;  %v799_v2 = vshll.u32 %v798_v48, 16  ;;  %v783_v20 = vcvt.f32.s32 %v3096_v28 }
 0x4f9   :  { %2052 = vpow2.f32 %v1720_v1  ;;  %v2039_v37 = vpop.eup %2038  ;;  %v1008_v32 = vadd.f32 1.0, %v2037_v56  ;;  %v828_v1 = vcvt.f32.s32 %v3094_v11 }
 0x4fa   :  { %2054 = vpow2.f32 %v1721_v23  ;;  %v2041_v10 = vpop.eup %2040  ;;  %v1005_v34 = vadd.f32 1.0, %v2039_v37 }
 0x4fb   :  { %2056 = vrcp.f32 %v1006_v29  ;;  %v2043_v40 = vpop.eup %2042  ;;  %v1010_v54 = vadd.f32 1.0, %v2041_v10  ;;  %v829_v10 = vshll.u32 %v828_v1, 16 }
 0x4fc   :  { %2058 = vrcp.f32 %v1003_v52  ;;  %v2045_v6 = vpop.eup %2044  ;;  %v1007_v58 = vadd.f32 1.0, %v2043_v40 }
 0x4fd   :  { %2060 = vrcp.f32 %v1008_v32  ;;  %v1009_v55 = vadd.f32 1.0, %v2045_v6 }
 0x4fe   :  { %2062 = vpow2.f32 %v1723_v26 }
 0x4ff   :  { %2064 = vrcp.f32 %v1005_v34 }
 0x500   :  { %2066 = vrcp.f32 %v1010_v54 }
 0x501   :  { %2068 = vrcp.f32 %v1007_v58 }
 0x502   :  { %2070 = vrcp.f32 %v1009_v55 }
 0x503   :  { %v2047_v63 = vpop.eup %2046 }
 0x504   :  { %v2049_v30 = vpop.eup %2048 }
 0x505   :  { %v2051_v33 = vpop.eup %2050  ;;  %v1011_v51 = vadd.f32 1.0, %v2049_v30  ;;  %v858_v30 = vcvt.f32.s32 %v3113_v18 }
 0x506   :  { %v2053_v15 = vpop.eup %2052 }
 0x507   :  { %v2055_v57 = vpop.eup %2054  ;;  %v1012_v52 = vadd.f32 1.0, %v2053_v15  ;;  %2072 = vrcp.f32 %v1011_v51 }
 0x508   :  { %v2057_v35 = vpop.eup %2056  ;;  %v1013_v28 = vadd.f32 1.0, %v2055_v57 }
 0x509   :  { %v2059_v11 = vpop.eup %2058  ;;  %2074 = vrcp.f32 %v1012_v52 }
 0x50a   :  { %2076 = vrcp.f32 %v1013_v28 }
 0x515   :  { %v706_v42 = vpop.xlane.xlu1 %705 }
 0x516   :  { %v707_v44 = vcvt.f32.s32 %v706_v42  ;;  %v2061_v42 = vpop.eup %2060 }
 0x517   :  { %v2063_v40 = vpop.eup %2062 }
 0x518   :  { %v710_v43 = vadd.s32 %v709_v19, %v707_v44  ;;  %v784_v19 = vshll.u32 %v783_v20, 16 }
 0x519   :  { %v736_v41 = vpop.xlane.xlu1 %735 }
 0x51a   :  { %vm922_vm6 = vcmp.eq.s32.totalorder %v2431_v36, %v710_v43  ;;  %v737_v3 = vcvt.f32.s32 %v736_v41  ;;  %v2065_v43 = vpop.eup %2064  ;;  %v1015_v41 = vadd.f32 1.0, %v2063_v40  ;;  %v888_v40 = vcvt.f32.s32 %v3130_v27 }
 0x51b   :  { %vm938_vm1 = vmor %vm570_vm7, %vm922_vm6 }
 0x51c   :  { %v1050_v25 = vsel %vm938_vm1, %v2047_v63, 0.0  ;;  %v740_v14 = vadd.s32 %v739_v5, %v737_v3  ;;  %v814_v5 = vshll.u32 %v813_v59, 16  ;;  %v2067_v3 = vpop.eup %2066  ;;  %v843_v63 = vcvt.f32.s32 %v3109_v60 }
 0x51d   :  { %1066 = vst.msk [vmem:[%s3303_s4 + $0x8] sm:$0xff] %vm248_vm0, %v1050_v25  ;;  %v766_v62 = vpop.xlane.xlu1 %765  ;;  %v721_v53 = vpop.xlane.xlu0 %720  ;;  %2078 = vrcp.f32 %v1015_v41 }
 0x51e   :  { %vm924_vm7 = vcmp.eq.s32.totalorder %v2431_v36, %v740_v14  ;;  %v767_v21 = vcvt.f32.s32 %v766_v62  ;;  %v722_v61 = vcvt.f32.s32 %v721_v53  ;;  %v2069_v58 = vpop.eup %2068  ;;  %v844_v12 = vshll.u32 %v843_v63, 16 }
 0x51f   :  { %vm940_vm4 = vmor %vm572_vm9, %vm924_vm7  ;;  %v2071_v14 = vpop.eup %2070 }
 0x520   :  { %v1052_v8 = vsel %vm940_vm4, %v2051_v33, 0.0  ;;  %v770_v17 = vadd.s32 %v769_v46, %v767_v21  ;;  %v725_v0 = vadd.s32 %v724_v31, %v722_v61  ;;  %v873_v46 = vcvt.f32.s32 %v3118_v39  ;;  %v2073_v53 = vpop.eup %2072 }
 0x521   :  { %1068 = vst.msk [vmem:[%s3303_s4 + $0x18] sm:$0xff] %vm248_vm0, %v1052_v8  ;;  %v796_v23 = vpop.xlane.xlu1 %795  ;;  %v751_v7 = vpop.xlane.xlu0 %750  ;;  %v859_v31 = vshll.u32 %v858_v30, 16  ;;  %v903_v8 = vcvt.f32.s32 %v3122_v38  ;;  %v3361_v38 = vld [vmem:[#allocation14_spill] sm:$0xff] }
 0x522   :  { %vm926_vm9 = vcmp.eq.s32.totalorder %v2431_v36, %v770_v17  ;;  %vm923_vm5 = vcmp.eq.s32.totalorder %v2431_v36, %v725_v0  ;;  %v797_v56 = vcvt.f32.s32 %v796_v23  ;;  %v752_v29 = vcvt.f32.s32 %v751_v7  ;;  %v2075_v1 = vpop.eup %2074 }
 0x523   :  { %vm942_vm3 = vmor %vm574_vm10, %vm926_vm9  ;;  %v874_v51 = vshll.u32 %v873_v46, 16  ;;  %v2077_v23 = vpop.eup %2076  ;;  %v904_v7 = vshll.u32 %v903_v8, 16 }
 0x524   :  { %v1054_v37 = vsel %vm942_vm3, %v2057_v35, 0.0  ;;  %vm939_vm6 = vmor %vm571_vm8, %vm923_vm5  ;;  %v800_v32 = vadd.s32 %v799_v2, %v797_v56  ;;  %v755_v26 = vadd.s32 %v754_v16, %v752_v29  ;;  %v3363_v35 = vld [vmem:[#allocation15_spill] sm:$0xff] }
 0x525   :  { %1070 = vst.msk [vmem:[%s3303_s4 + $0x28] sm:$0xff] %vm248_vm0, %v1054_v37  ;;  %v1051_v24 = vsel %vm939_vm6, %v2059_v11, 0.0  ;;  %v826_v44 = vpop.xlane.xlu1 %825  ;;  %v781_v34 = vpop.xlane.xlu0 %780  ;;  %vm3362_vm6 = vcmp.eq.s32.totalorder %v2431_v36, %v3361_v38  ;;  %v3365_v37 = vld [vmem:[#allocation17_spill] sm:$0xff] }
 0x526   :  { %1067 = vst.msk [vmem:[%s3303_s4 + $0x10] sm:$0xff] %vm248_vm0, %v1051_v24  ;;  %vm928_vm8 = vcmp.eq.s32.totalorder %v2431_v36, %v800_v32  ;;  %vm925_vm10 = vcmp.eq.s32.totalorder %v2431_v36, %v755_v26  ;;  %v827_v45 = vcvt.f32.s32 %v826_v44  ;;  %v782_v9 = vcvt.f32.s32 %v781_v34  ;;  %v3367_v26 = vld [vmem:[#allocation18_spill] sm:$0xff] }
 0x527   :  { %vm944_vm1 = vmor %vm576_vm12, %vm928_vm8 }
 0x528   :  { %v1056_v6 = vsel %vm944_vm1, %v2061_v42, 0.0  ;;  %vm941_vm7 = vmor %vm573_vm11, %vm925_vm10  ;;  %v830_v54 = vadd.s32 %v829_v10, %v827_v45  ;;  %v785_v50 = vadd.s32 %v784_v19, %v782_v9  ;;  %vm3364_vm10 = vcmp.eq.s32.totalorder %v2431_v36, %v3363_v35  ;;  %v3368_v10 = vld [vmem:[#allocation20_spill] sm:$0xff] }
 0x529   :  { %1072 = vst.msk [vmem:[%s3303_s4 + $0x38] sm:$0xff] %vm248_vm0, %v1056_v6  ;;  %v1053_v4 = vsel %vm941_vm7, %v2065_v43, 0.0  ;;  %v811_v13 = vpop.xlane.xlu0 %810  ;;  %v1722_v42 = vmul.f32 -1.442695, %v3367_v26  ;;  %v1724_v19 = vmul.f32 -1.442695, %v3368_v10  ;;  %v918_v43 = vcvt.f32.s32 %v3134_v47 }
 0x52a   :  { %1069 = vst.msk [vmem:[%s3303_s4 + $0x20] sm:$0xff] %vm248_vm0, %v1053_v4  ;;  %vm930_vm11 = vcmp.eq.s32.totalorder %v2431_v36, %v830_v54  ;;  %vm927_vm12 = vcmp.eq.s32.totalorder %v2431_v36, %v785_v50  ;;  %v812_v22 = vcvt.f32.s32 %v811_v13  ;;  %v2079_v28 = vpop.eup %2078  ;;  %v889_v9 = vshll.u32 %v888_v40, 16  ;;  %v3369_v13 = vld [vmem:[#allocation16_spill] sm:$0xff]  ;;  %v3371_v47 = vld [vmem:[#allocation19_spill] sm:$0xff] }
 0x52b   :  { %vm946_vm4 = vmor %vm578_vm14, %vm930_vm11  ;;  %vm3366_vm11 = vcmp.eq.s32.totalorder %v2431_v36, %v3365_v37  ;;  %2080 = vpow2.f32 %v1722_v42  ;;  %v919_v41 = vshll.u32 %v918_v43, 16 }
 0x52c   :  { %v1058_v55 = vsel %vm946_vm4, %v2067_v3, 0.0  ;;  %vm943_vm9 = vmor %vm575_vm13, %vm927_vm12  ;;  %v815_v25 = vadd.s32 %v814_v5, %v812_v22  ;;  %2082 = vpow2.f32 %v1724_v19 }
 0x52d   :  { %1074 = vst.msk [vmem:[%s3303_s4 + $0x48] sm:$0xff] %vm248_vm0, %v1058_v55  ;;  %v1055_v48 = vsel %vm943_vm9, %v2069_v58, 0.0  ;;  %v841_v49 = vpop.xlane.xlu0 %840  ;;  %vm3370_vm9 = vcmp.eq.s32.totalorder %v2431_v36, %v3369_v13 }
 0x52e   :  { %1071 = vst.msk [vmem:[%s3303_s4 + $0x30] sm:$0xff] %vm248_vm0, %v1055_v48  ;;  %vm929_vm13 = vcmp.eq.s32.totalorder %v2431_v36, %v815_v25  ;;  %v842_v18 = vcvt.f32.s32 %v841_v49 }
 0x52f   :  { %vm945_vm14 = vmor %vm577_vm15, %vm929_vm13  ;;  %v856_v39 = vpop.xlane.xlu1 %855 }
 0x530   :  { %v1057_v21 = vsel %vm945_vm14, %v2071_v14, 0.0  ;;  %v845_v61 = vadd.s32 %v844_v12, %v842_v18  ;;  %v857_v33 = vcvt.f32.s32 %v856_v39 }
 0x531   :  { %1073 = vst.msk [vmem:[%s3303_s4 + $0x40] sm:$0xff] %vm248_vm0, %v1057_v21  ;;  %v871_v15 = vpop.xlane.xlu0 %870 }
 0x532   :  { %vm931_vm5 = vcmp.eq.s32.totalorder %v2431_v36, %v845_v61  ;;  %v860_v17 = vadd.s32 %v859_v31, %v857_v33  ;;  %v872_v0 = vcvt.f32.s32 %v871_v15 }
 0x533   :  { %vm947_vm15 = vmor %vm579_vm2, %vm931_vm5  ;;  %vm3372_vm5 = vcmp.eq.s32.totalorder %v2431_v36, %v3371_v47 }
 0x534   :  { %v1059_v2 = vsel %vm947_vm15, %v2073_v53, 0.0  ;;  %vm932_vm3 = vcmp.eq.s32.totalorder %v2431_v36, %v860_v17  ;;  %v875_v16 = vadd.s32 %v874_v51, %v872_v0 }
 0x535   :  { %1075 = vst.msk [vmem:[%s3303_s4 + $0x50] sm:$0xff] %vm248_vm0, %v1059_v2  ;;  %vm948_vm8 = vmor %vm3362_vm6, %vm932_vm3  ;;  %v901_v20 = vpop.xlane.xlu0 %900 }
 0x536   :  { %v1060_v56 = vsel %vm948_vm8, %v2075_v1, 0.0  ;;  %vm933_vm2 = vcmp.eq.s32.totalorder %v2431_v36, %v875_v16  ;;  %v902_v29 = vcvt.f32.s32 %v901_v20 }
 0x537   :  { %1076 = vst.msk [vmem:[%s3303_s4 + $0x58] sm:$0xff] %vm248_vm0, %v1060_v56  ;;  %vm949_vm1 = vmor %vm3364_vm10, %vm933_vm2 }
 0x538   :  { %v1061_v52 = vsel %vm949_vm1, %v2077_v23, 0.0  ;;  %v905_v11 = vadd.s32 %v904_v7, %v902_v29  ;;  %v2081_v59 = vpop.eup %2080 }
 0x539   :  { %1077 = vst.msk [vmem:[%s3303_s4 + $0x60] sm:$0xff] %vm248_vm0, %v1061_v52  ;;  %v1014_v24 = vadd.f32 1.0, %v2081_v59  ;;  %v2083_v44 = vpop.eup %2082 }
 0x53a   :  { %vm935_vm7 = vcmp.eq.s32.totalorder %v2431_v36, %v905_v11  ;;  %v1016_v34 = vadd.f32 1.0, %v2083_v44 }
 0x53b   :  { %vm951_vm12 = vmor %vm3366_vm11, %vm935_vm7  ;;  %2084 = vrcp.f32 %v1014_v24 }
 0x53c   :  { %v1063_v32 = vsel %vm951_vm12, %v2079_v28, 0.0  ;;  %2086 = vrcp.f32 %v1016_v34 }
 0x53d   :  { %1079 = vst.msk [vmem:[%s3303_s4 + $0x70] sm:$0xff] %vm248_vm0, %v1063_v32 }
 0x548   :  { %v2085_v4 = vpop.eup %2084 }
 0x549   :  { %v2087_v27 = vpop.eup %2086 }
 0x568   :  { %v886_v45 = vpop.xlane.xlu1 %885 }
 0x569   :  { %v887_v6 = vcvt.f32.s32 %v886_v45 }
 0x56b   :  { %v890_v54 = vadd.s32 %v889_v9, %v887_v6 }
 0x56c   :  { %v916_v50 = vpop.xlane.xlu1 %915 }
 0x56d   :  { %vm934_vm4 = vcmp.eq.s32.totalorder %v2431_v36, %v890_v54  ;;  %v917_v5 = vcvt.f32.s32 %v916_v50 }
 0x56e   :  { %vm950_vm13 = vmor %vm3370_vm9, %vm934_vm4 }
 0x56f   :  { %v1062_v3 = vsel %vm950_vm13, %v2085_v4, 0.0  ;;  %v920_v63 = vadd.s32 %v919_v41, %v917_v5 }
 0x570   :  { %1078 = vst.msk [vmem:[%s3303_s4 + $0x68] sm:$0xff] %vm248_vm0, %v1062_v3 }
 0x571   :  { %vm936_vm14 = vcmp.eq.s32.totalorder %v2431_v36, %v920_v63 }
 0x572   :  { %vm952_vm15 = vmor %vm3372_vm5, %vm936_vm14 }
 0x573   :  { %v1064_v22 = vsel %vm952_vm15, %v2087_v27, 0.0 }
 0x574   :  { %1080 = vst.msk [vmem:[%s3303_s4 + $0x78] sm:$0xff] %vm248_vm0, %v1064_v22 }
 0x575   :  { %2152 = dma.done.wait [#allocation5], 2048  }
 0x576   :  { %2153 = vsyncadd [#allocation5], 4294965248 }
 0x577   :  { %1706 = vsyncpa [#allocation4], 1 }
 0x578   :  { %1707 = vsyncpa [#allocation7], 1 }
 0x579   :  { %1708 = vsyncpa [#allocation5], 1 }

</bundles_post_ra>
